<compile_context>
chip_gen: v6e
topology: v6e:2x2x1
jax: 0.10.0
libtpu: 0.0.40
codegen_flags: <defaults>
</compile_context>

<pallas_src>
import jax
import jax.numpy as jnp
from jax.experimental import pallas as pl
from jax.experimental.pallas import tpu as pltpu


def _round_up(x, m):
    return ((x + m - 1) // m) * m


def _tree_sum(terms):
    """Pairwise-tree sum of a list of arrays (shorter dependence chain)."""
    while len(terms) > 1:
        nxt = [terms[i] + terms[i + 1] for i in range(0, len(terms) - 1, 2)]
        if len(terms) % 2:
            nxt.append(terms[-1])
        terms = nxt
    return terms[0]


def _make_le_kernel(H, W, KS, LPAD):
    """Kernel factory; H, W, kernel-size and pad offset are baked in statically."""
    HW = H * W
    P = KS // 2

    def kernel(sconv_ref, x_ref, e_ref, w1t_ref, w2_ref, out_ref, sat_ref, pad_ref):
        # sconv_ref:(KS,KS) VMEM f32   x_ref:(C,HW)   e_ref:(1,HW)
        # w1t_ref/w2_ref:(C,Cr)        out_ref:(C,HW) sat_ref:(1,HW)
        # pad_ref: (1, LPAD + HW + LPAD) zero-padded flattened channel-max map
        x = x_ref[...].astype(jnp.float32)               # (C, HW) lane-dense
        e = e_ref[...].astype(jnp.float32)                # (1, HW)

        # ---------------- spatial attention ----------------
        layer_edge = x * e                                 # broadcast over C rows
        m = jnp.max(layer_edge, axis=0, keepdims=True)     # (1, HW) max over channels

        # zero only the halo (y out-of-range padding); interior fully overwritten
        zeros_halo = jnp.zeros((1, LPAD), jnp.float32)
        pad_ref[:, pl.ds(0, LPAD)] = zeros_halo
        pad_ref[:, pl.ds(LPAD + HW, LPAD)] = zeros_halo
        pad_ref[:, pl.ds(LPAD, HW)] = m                    # lane-aligned store

        # (KS, HW) stack of the KS dy-shifted maps -- KS slices, not KS*KS.
        rows = jnp.concatenate(
            [pad_ref[:, pl.ds(LPAD + (dy - P) * W, HW)] for dy in range(KS)],
            axis=0)                                        # (KS, HW)

        w = sconv_ref[...].astype(jnp.float32)             # (KS, KS) vreg operand

        # Column-validity masks generated in-kernel (compile-time pattern).
        col = jax.lax.broadcasted_iota(jnp.int32, (1, HW), 1) % W   # (1, HW)

        terms = []
        for dx in range(KS):                               # 7 dense col-sums + shifts
            d = dx - P
            wcol = w[:, dx:dx + 1]                         # (KS, 1) weight column
            # dense (KS,HW)*(KS,1) multiply (VPU) + sublane reduce (XLU)
            csum = jnp.sum(rows * wcol, axis=0, keepdims=True)       # (1, HW)
            # in-register lane shift by d (static slices + concat); wrap-around
            # at the flat HW boundary is killed by the column mask below.
            shifted = jnp.roll(csum, -d, axis=1) if d != 0 else csum
            valid = jnp.logical_and(col + d >= 0, col + d < W)       # row-wrap mask
            terms.append(jnp.where(valid, shifted, 0.0))
        acc = _tree_sum(terms)                             # pairwise tree combine

        sat = jax.nn.sigmoid(acc)                          # (1, HW)
        sat_ref[...] = sat.astype(sat_ref.dtype)

        # ---------------- channel attention ----------------
        lsat = x + x * sat                                 # (C, HW)
        pooled = jnp.max(lsat, axis=1, keepdims=True)      # (C, 1) global max pool

        # tiny FCs on the VPU (broadcast-mul + reduce); no MXU padding waste
        w1t = w1t_ref[...].astype(jnp.float32)             # (C, Cr) = fc1.weight^T
        w2 = w2_ref[...].astype(jnp.float32)               # (C, Cr) = fc2.weight
        h1 = jnp.maximum(
            jnp.sum(w1t * pooled, axis=0, keepdims=True), 0.0)       # (1, Cr)
        h2 = jnp.sum(w2 * h1, axis=1, keepdims=True)       # (C, 1)
        cat = jax.nn.sigmoid(h2)                           # (C, 1)

        out_ref[...] = (x * cat).astype(out_ref.dtype)     # lane-dense store

    return kernel


def le_forward(layers_nchw, edge_nchw, sconv, w1, w2):
    """layers_nchw: (B,C,H,W), edge_nchw: (B,1,H,W)
       sconv: (KS,KS)  w1: (C//16, C)  w2: (C, C//16)"""
    B, C, H, W = layers_nchw.shape
    Cr = w1.shape[0]
    KS = sconv.shape[0]
    P = KS // 2
    HW = H * W

    # Free reshapes (contiguous trailing dims) -- no transposes of the big tensor.
    layers = layers_nchw.reshape(B, C, HW)
    edge = edge_nchw.reshape(B, 1, HW)
    w1t = jnp.transpose(w1)                                # (C, Cr), tiny
    sconv_f32 = sconv.astype(jnp.float32)                  # (KS, KS), tiny

    LPAD = _round_up(P * W + P, 128)                       # aligned halo width

    kernel = _make_le_kernel(H, W, KS, LPAD)

    out, sat = pl.pallas_call(
        kernel,
        out_shape=(jax.ShapeDtypeStruct((B, C, HW), layers_nchw.dtype),
                   jax.ShapeDtypeStruct((B, 1, HW), jnp.float32)),
        grid=(B,),
        in_specs=[
            pl.BlockSpec((KS, KS), lambda b: (0, 0)),                    # sconv (VMEM)
            pl.BlockSpec((pl.Squeezed(), C, HW), lambda b: (b, 0, 0)),   # layers
            pl.BlockSpec((pl.Squeezed(), 1, HW), lambda b: (b, 0, 0)),   # edge
            pl.BlockSpec((C, Cr), lambda b: (0, 0)),                     # w1^T
            pl.BlockSpec((C, Cr), lambda b: (0, 0)),                     # w2
        ],
        out_specs=(
            pl.BlockSpec((pl.Squeezed(), C, HW), lambda b: (b, 0, 0)),   # out
            pl.BlockSpec((pl.Squeezed(), 1, HW), lambda b: (b, 0, 0)),   # SAT
        ),
        scratch_shapes=[pltpu.VMEM((1, LPAD + HW + LPAD), jnp.float32)],
        compiler_params=pltpu.CompilerParams(dimension_semantics=("parallel",)),
    )(sconv_f32, layers, edge, w1t, w2)

    return out.reshape(B, C, H, W), sat.reshape(B, 1, H, W)


# ----------------------------------------------------------------------------
# Pure-JAX reference (for correctness check)
# ----------------------------------------------------------------------------
def le_reference(layers, edge, sconv, w1, w2):
    layer_edge = layers * edge
    m = jnp.max(layer_edge, axis=1, keepdims=True)                    # (B,1,H,W)
    conv = jax.lax.conv_general_dilated(
        m, sconv.reshape(1, 1, *sconv.shape), window_strides=(1, 1),
        padding=((3, 3), (3, 3)),
        dimension_numbers=("NCHW", "OIHW", "NCHW"))
    sat = jax.nn.sigmoid(conv)                                        # (B,1,H,W)
    lsat = layers + layers * sat
    pooled = jnp.max(lsat, axis=(2, 3))                               # (B,C)
    h1 = jax.nn.relu(pooled @ w1.T)                                   # (B,Cr)
    h2 = h1 @ w2.T                                                    # (B,C)
    cat = jax.nn.sigmoid(h2)[:, :, None, None]                        # (B,C,1,1)
    return layers * cat, sat


if __name__ == "__main__":
    B, C, H, W = 2, 32, 16, 16          # dim=32 -> hidden channels = 32//16 = 2
    Cr = C // 16

    key = jax.random.PRNGKey(0)
    k1, k2, k3, k4, k5 = jax.random.split(key, 5)
    layers = jax.random.normal(k1, (B, C, H, W), jnp.float32)
    edge = jax.random.uniform(k2, (B, 1, H, W), jnp.float32)
    # deterministic synthetic weights (all Conv2d's are bias=False)
    sconv = jax.random.normal(k3, (7, 7), jnp.float32) * 0.1          # SpatialAttention.conv1
    w1 = jax.random.normal(k4, (Cr, C), jnp.float32) * 0.1            # ChannelAttention.fc1
    w2 = jax.random.normal(k5, (C, Cr), jnp.float32) * 0.1            # ChannelAttention.fc2

    out, sat = le_forward(layers, edge, sconv, w1, w2)
    jax.block_until_ready(out)
    jax.block_until_ready(sat)

    out_ref, sat_ref = le_reference(layers, edge, sconv, w1, w2)
    assert jnp.allclose(sat, sat_ref, atol=1e-4, rtol=1e-4), "SAT mismatch"
    assert jnp.allclose(out, out_ref, atol=1e-4, rtol=1e-4), "OUT mismatch"

    print("KERNEL_OK")
</pallas_src>

<mosaic_0001>
module attributes {stable_mosaic.version = 11 : i64} {
  func.func @kernel(%arg0: i32, %arg1: memref<7x7xf32, #tpu.memory_space<vmem>>, %arg2: memref<1x32x256xf32, #tpu.memory_space<vmem>>, %arg3: memref<1x1x256xf32, #tpu.memory_space<vmem>>, %arg4: memref<32x2xf32, #tpu.memory_space<vmem>>, %arg5: memref<32x2xf32, #tpu.memory_space<vmem>>, %arg6: memref<1x32x256xf32, #tpu.memory_space<vmem>>, %arg7: memref<1x1x256xf32, #tpu.memory_space<vmem>>, %arg8: memref<1x512xf32, #tpu.memory_space<vmem>>) attributes {dimension_semantics = [#tpu.dimension_semantics<parallel>], iteration_bounds = array<i64: 2>, scalar_prefetch = 0 : i64, scratch_operands = 1 : i64, tpu.core_type = #tpu.core_type<tc>, window_params = [{pipeline_mode = #tpu.pipeline_mode<synchronous>, transform_indices = @transform_0, window_bounds = array<i64: 7, 7>}, {transform_indices = @transform_1, window_bounds = array<i64: 1, 32, 256>}, {transform_indices = @transform_2, window_bounds = array<i64: 1, 1, 256>}, {pipeline_mode = #tpu.pipeline_mode<synchronous>, transform_indices = @transform_3, window_bounds = array<i64: 32, 2>}, {pipeline_mode = #tpu.pipeline_mode<synchronous>, transform_indices = @transform_4, window_bounds = array<i64: 32, 2>}, {transform_indices = @transform_5, window_bounds = array<i64: 1, 32, 256>}, {transform_indices = @transform_6, window_bounds = array<i64: 1, 1, 256>}]} {
    %c0 = arith.constant 0 : index
    %c0_0 = arith.constant 0 : index
    %c0_1 = arith.constant 0 : index
    %0 = vector.load %arg2[%c0, %c0_0, %c0_1] : memref<1x32x256xf32, #tpu.memory_space<vmem>>, vector<1x32x256xf32>
    %1 = vector.shape_cast %0 : vector<1x32x256xf32> to vector<32x256xf32>
    %c0_2 = arith.constant 0 : index
    %c0_3 = arith.constant 0 : index
    %c0_4 = arith.constant 0 : index
    %2 = vector.load %arg3[%c0_2, %c0_3, %c0_4] : memref<1x1x256xf32, #tpu.memory_space<vmem>>, vector<1x1x256xf32>
    %3 = vector.shape_cast %2 : vector<1x1x256xf32> to vector<1x256xf32>
    %4 = vector.broadcast %3 : vector<1x256xf32> to vector<32x256xf32>
    %5 = arith.mulf %1, %4 : vector<32x256xf32>
    %cst = arith.constant dense<0xFF800000> : vector<256xf32>
    %6 = vector.multi_reduction <maximumf>, %5, %cst [0] : vector<32x256xf32> to vector<256xf32>
    %7 = vector.shape_cast %6 : vector<256xf32> to vector<1x256xf32>
    %cst_5 = arith.constant 0.000000e+00 : f32
    %8 = vector.broadcast %cst_5 : f32 to vector<1x128xf32>
    %c0_6 = arith.constant 0 : index
    %c0_7 = arith.constant 0 : index
    %9 = vector.load %arg8[%c0_6, %c0_7] : memref<1x512xf32, #tpu.memory_space<vmem>>, vector<1x128xf32>
    tpu.vector_store %arg8[%c0_6, %c0_7], %8 {strides = array<i32>} : memref<1x512xf32, #tpu.memory_space<vmem>>, vector<1x128xf32>,
    %c0_8 = arith.constant 0 : index
    %c384 = arith.constant 384 : index
    %10 = vector.load %arg8[%c0_8, %c384] : memref<1x512xf32, #tpu.memory_space<vmem>>, vector<1x128xf32>
    tpu.vector_store %arg8[%c0_8, %c384], %8 {strides = array<i32>} : memref<1x512xf32, #tpu.memory_space<vmem>>, vector<1x128xf32>,
    %c0_9 = arith.constant 0 : index
    %c128 = arith.constant 128 : index
    %11 = vector.load %arg8[%c0_9, %c128] : memref<1x512xf32, #tpu.memory_space<vmem>>, vector<1x256xf32>
    tpu.vector_store %arg8[%c0_9, %c128], %7 {strides = array<i32>} : memref<1x512xf32, #tpu.memory_space<vmem>>, vector<1x256xf32>,
    %c0_10 = arith.constant 0 : index
    %c80 = arith.constant 80 : index
    %12 = vector.load %arg8[%c0_10, %c80] : memref<1x512xf32, #tpu.memory_space<vmem>>, vector<1x256xf32>
    %c0_11 = arith.constant 0 : index
    %c96 = arith.constant 96 : index
    %13 = vector.load %arg8[%c0_11, %c96] : memref<1x512xf32, #tpu.memory_space<vmem>>, vector<1x256xf32>
    %c0_12 = arith.constant 0 : index
    %c112 = arith.constant 112 : index
    %14 = vector.load %arg8[%c0_12, %c112] : memref<1x512xf32, #tpu.memory_space<vmem>>, vector<1x256xf32>
    %c0_13 = arith.constant 0 : index
    %c128_14 = arith.constant 128 : index
    %15 = vector.load %arg8[%c0_13, %c128_14] : memref<1x512xf32, #tpu.memory_space<vmem>>, vector<1x256xf32>
    %c0_15 = arith.constant 0 : index
    %c144 = arith.constant 144 : index
    %16 = vector.load %arg8[%c0_15, %c144] : memref<1x512xf32, #tpu.memory_space<vmem>>, vector<1x256xf32>
    %c0_16 = arith.constant 0 : index
    %c160 = arith.constant 160 : index
    %17 = vector.load %arg8[%c0_16, %c160] : memref<1x512xf32, #tpu.memory_space<vmem>>, vector<1x256xf32>
    %c0_17 = arith.constant 0 : index
    %c176 = arith.constant 176 : index
    %18 = vector.load %arg8[%c0_17, %c176] : memref<1x512xf32, #tpu.memory_space<vmem>>, vector<1x256xf32>
    %19 = tpu.concatenate %12, %13, %14, %15, %16, %17, %18 in 0 : vector<1x256xf32>, vector<1x256xf32>, vector<1x256xf32>, vector<1x256xf32>, vector<1x256xf32>, vector<1x256xf32>, vector<1x256xf32> -> vector<7x256xf32>
    %c0_18 = arith.constant 0 : index
    %c0_19 = arith.constant 0 : index
    %20 = vector.load %arg1[%c0_18, %c0_19] : memref<7x7xf32, #tpu.memory_space<vmem>>, vector<7x7xf32>
    %21 = tpu.iota {dimensions = array<i32: 1>} : vector<1x256xi32>
    %c16_i32 = arith.constant 16 : i32
    %c0_i32 = arith.constant 0 : i32
    %22 = arith.cmpi eq, %c16_i32, %c0_i32 : i32
    %c1_i32 = arith.constant 1 : i32
    %23 = arith.select %22, %c1_i32, %c16_i32 : i32
    %24 = vector.broadcast %23 : i32 to vector<1x256xi32>
    %25 = arith.remsi %21, %24 : vector<1x256xi32>
    %c0_i32_20 = arith.constant 0 : i32
    %26 = vector.broadcast %c0_i32_20 : i32 to vector<1x256xi32>
    %27 = arith.cmpi ne, %25, %26 : vector<1x256xi32>
    %c0_i32_21 = arith.constant 0 : i32
    %28 = vector.broadcast %c0_i32_21 : i32 to vector<1x256xi32>
    %29 = arith.cmpi slt, %25, %28 : vector<1x256xi32>
    %c0_i32_22 = arith.constant 0 : i32
    %30 = arith.cmpi slt, %23, %c0_i32_22 : i32
    %31 = vector.broadcast %30 : i1 to vector<1x256xi1>
    %32 = vector.broadcast %31 : vector<1x256xi1> to vector<1x256xi1>
    %33 = arith.xori %29, %32 : vector<1x256xi1>
    %34 = arith.andi %33, %27 : vector<1x256xi1>
    %35 = vector.broadcast %23 : i32 to vector<1x256xi32>
    %36 = arith.addi %25, %35 : vector<1x256xi32>
    %37 = arith.select %34, %36, %25 : vector<1x256xi1>, vector<1x256xi32>
    %38 = vector.extract_strided_slice %20 {offsets = [0, 0], sizes = [7, 1], strides = [1, 1]} : vector<7x7xf32> to vector<7x1xf32>
    %39 = vector.broadcast %38 : vector<7x1xf32> to vector<7x256xf32>
    %40 = arith.mulf %19, %39 : vector<7x256xf32>
    %cst_23 = arith.constant dense<0.000000e+00> : vector<256xf32>
    %41 = vector.multi_reduction <add>, %40, %cst_23 [0] : vector<7x256xf32> to vector<256xf32>
    %42 = vector.shape_cast %41 : vector<256xf32> to vector<1x256xf32>
    %43 = vector.extract_strided_slice %42 {offsets = [0, 253], sizes = [1, 3], strides = [1, 1]} : vector<1x256xf32> to vector<1x3xf32>
    %44 = vector.extract_strided_slice %42 {offsets = [0, 0], sizes = [1, 253], strides = [1, 1]} : vector<1x256xf32> to vector<1x253xf32>
    %45 = tpu.concatenate %43, %44 in 1 : vector<1x3xf32>, vector<1x253xf32> -> vector<1x256xf32>
    %c-3_i32 = arith.constant -3 : i32
    %46 = vector.broadcast %c-3_i32 : i32 to vector<1x256xi32>
    %47 = arith.addi %37, %46 : vector<1x256xi32>
    %c0_i32_24 = arith.constant 0 : i32
    %48 = vector.broadcast %c0_i32_24 : i32 to vector<1x256xi32>
    %49 = arith.cmpi sge, %47, %48 : vector<1x256xi32>
    %c-3_i32_25 = arith.constant -3 : i32
    %50 = vector.broadcast %c-3_i32_25 : i32 to vector<1x256xi32>
    %51 = arith.addi %37, %50 : vector<1x256xi32>
    %c16_i32_26 = arith.constant 16 : i32
    %52 = vector.broadcast %c16_i32_26 : i32 to vector<1x256xi32>
    %53 = arith.cmpi slt, %51, %52 : vector<1x256xi32>
    %54 = arith.andi %49, %53 : vector<1x256xi1>
    %cst_27 = arith.constant 0.000000e+00 : f32
    %55 = vector.broadcast %cst_27 : f32 to vector<1x256xf32>
    %56 = arith.select %54, %45, %55 : vector<1x256xi1>, vector<1x256xf32>
    %57 = vector.extract_strided_slice %20 {offsets = [0, 1], sizes = [7, 1], strides = [1, 1]} : vector<7x7xf32> to vector<7x1xf32>
    %58 = vector.broadcast %57 : vector<7x1xf32> to vector<7x256xf32>
    %59 = arith.mulf %19, %58 : vector<7x256xf32>
    %cst_28 = arith.constant dense<0.000000e+00> : vector<256xf32>
    %60 = vector.multi_reduction <add>, %59, %cst_28 [0] : vector<7x256xf32> to vector<256xf32>
    %61 = vector.shape_cast %60 : vector<256xf32> to vector<1x256xf32>
    %62 = vector.extract_strided_slice %61 {offsets = [0, 254], sizes = [1, 2], strides = [1, 1]} : vector<1x256xf32> to vector<1x2xf32>
    %63 = vector.extract_strided_slice %61 {offsets = [0, 0], sizes = [1, 254], strides = [1, 1]} : vector<1x256xf32> to vector<1x254xf32>
    %64 = tpu.concatenate %62, %63 in 1 : vector<1x2xf32>, vector<1x254xf32> -> vector<1x256xf32>
    %c-2_i32 = arith.constant -2 : i32
    %65 = vector.broadcast %c-2_i32 : i32 to vector<1x256xi32>
    %66 = arith.addi %37, %65 : vector<1x256xi32>
    %c0_i32_29 = arith.constant 0 : i32
    %67 = vector.broadcast %c0_i32_29 : i32 to vector<1x256xi32>
    %68 = arith.cmpi sge, %66, %67 : vector<1x256xi32>
    %c-2_i32_30 = arith.constant -2 : i32
    %69 = vector.broadcast %c-2_i32_30 : i32 to vector<1x256xi32>
    %70 = arith.addi %37, %69 : vector<1x256xi32>
    %c16_i32_31 = arith.constant 16 : i32
    %71 = vector.broadcast %c16_i32_31 : i32 to vector<1x256xi32>
    %72 = arith.cmpi slt, %70, %71 : vector<1x256xi32>
    %73 = arith.andi %68, %72 : vector<1x256xi1>
    %cst_32 = arith.constant 0.000000e+00 : f32
    %74 = vector.broadcast %cst_32 : f32 to vector<1x256xf32>
    %75 = arith.select %73, %64, %74 : vector<1x256xi1>, vector<1x256xf32>
    %76 = vector.extract_strided_slice %20 {offsets = [0, 2], sizes = [7, 1], strides = [1, 1]} : vector<7x7xf32> to vector<7x1xf32>
    %77 = vector.broadcast %76 : vector<7x1xf32> to vector<7x256xf32>
    %78 = arith.mulf %19, %77 : vector<7x256xf32>
    %cst_33 = arith.constant dense<0.000000e+00> : vector<256xf32>
    %79 = vector.multi_reduction <add>, %78, %cst_33 [0] : vector<7x256xf32> to vector<256xf32>
    %80 = vector.shape_cast %79 : vector<256xf32> to vector<1x256xf32>
    %81 = vector.extract_strided_slice %80 {offsets = [0, 255], sizes = [1, 1], strides = [1, 1]} : vector<1x256xf32> to vector<1x1xf32>
    %82 = vector.extract_strided_slice %80 {offsets = [0, 0], sizes = [1, 255], strides = [1, 1]} : vector<1x256xf32> to vector<1x255xf32>
    %83 = tpu.concatenate %81, %82 in 1 : vector<1x1xf32>, vector<1x255xf32> -> vector<1x256xf32>
    %c-1_i32 = arith.constant -1 : i32
    %84 = vector.broadcast %c-1_i32 : i32 to vector<1x256xi32>
    %85 = arith.addi %37, %84 : vector<1x256xi32>
    %c0_i32_34 = arith.constant 0 : i32
    %86 = vector.broadcast %c0_i32_34 : i32 to vector<1x256xi32>
    %87 = arith.cmpi sge, %85, %86 : vector<1x256xi32>
    %c-1_i32_35 = arith.constant -1 : i32
    %88 = vector.broadcast %c-1_i32_35 : i32 to vector<1x256xi32>
    %89 = arith.addi %37, %88 : vector<1x256xi32>
    %c16_i32_36 = arith.constant 16 : i32
    %90 = vector.broadcast %c16_i32_36 : i32 to vector<1x256xi32>
    %91 = arith.cmpi slt, %89, %90 : vector<1x256xi32>
    %92 = arith.andi %87, %91 : vector<1x256xi1>
    %cst_37 = arith.constant 0.000000e+00 : f32
    %93 = vector.broadcast %cst_37 : f32 to vector<1x256xf32>
    %94 = arith.select %92, %83, %93 : vector<1x256xi1>, vector<1x256xf32>
    %95 = vector.extract_strided_slice %20 {offsets = [0, 3], sizes = [7, 1], strides = [1, 1]} : vector<7x7xf32> to vector<7x1xf32>
    %96 = vector.broadcast %95 : vector<7x1xf32> to vector<7x256xf32>
    %97 = arith.mulf %19, %96 : vector<7x256xf32>
    %cst_38 = arith.constant dense<0.000000e+00> : vector<256xf32>
    %98 = vector.multi_reduction <add>, %97, %cst_38 [0] : vector<7x256xf32> to vector<256xf32>
    %99 = vector.shape_cast %98 : vector<256xf32> to vector<1x256xf32>
    %c0_i32_39 = arith.constant 0 : i32
    %100 = vector.broadcast %c0_i32_39 : i32 to vector<1x256xi32>
    %101 = arith.addi %37, %100 : vector<1x256xi32>
    %c0_i32_40 = arith.constant 0 : i32
    %102 = vector.broadcast %c0_i32_40 : i32 to vector<1x256xi32>
    %103 = arith.cmpi sge, %101, %102 : vector<1x256xi32>
    %c0_i32_41 = arith.constant 0 : i32
    %104 = vector.broadcast %c0_i32_41 : i32 to vector<1x256xi32>
    %105 = arith.addi %37, %104 : vector<1x256xi32>
    %c16_i32_42 = arith.constant 16 : i32
    %106 = vector.broadcast %c16_i32_42 : i32 to vector<1x256xi32>
    %107 = arith.cmpi slt, %105, %106 : vector<1x256xi32>
    %108 = arith.andi %103, %107 : vector<1x256xi1>
    %cst_43 = arith.constant 0.000000e+00 : f32
    %109 = vector.broadcast %cst_43 : f32 to vector<1x256xf32>
    %110 = arith.select %108, %99, %109 : vector<1x256xi1>, vector<1x256xf32>
    %111 = vector.extract_strided_slice %20 {offsets = [0, 4], sizes = [7, 1], strides = [1, 1]} : vector<7x7xf32> to vector<7x1xf32>
    %112 = vector.broadcast %111 : vector<7x1xf32> to vector<7x256xf32>
    %113 = arith.mulf %19, %112 : vector<7x256xf32>
    %cst_44 = arith.constant dense<0.000000e+00> : vector<256xf32>
    %114 = vector.multi_reduction <add>, %113, %cst_44 [0] : vector<7x256xf32> to vector<256xf32>
    %115 = vector.shape_cast %114 : vector<256xf32> to vector<1x256xf32>
    %116 = vector.extract_strided_slice %115 {offsets = [0, 1], sizes = [1, 255], strides = [1, 1]} : vector<1x256xf32> to vector<1x255xf32>
    %117 = vector.extract_strided_slice %115 {offsets = [0, 0], sizes = [1, 1], strides = [1, 1]} : vector<1x256xf32> to vector<1x1xf32>
    %118 = tpu.concatenate %116, %117 in 1 : vector<1x255xf32>, vector<1x1xf32> -> vector<1x256xf32>
    %c1_i32_45 = arith.constant 1 : i32
    %119 = vector.broadcast %c1_i32_45 : i32 to vector<1x256xi32>
    %120 = arith.addi %37, %119 : vector<1x256xi32>
    %c0_i32_46 = arith.constant 0 : i32
    %121 = vector.broadcast %c0_i32_46 : i32 to vector<1x256xi32>
    %122 = arith.cmpi sge, %120, %121 : vector<1x256xi32>
    %c1_i32_47 = arith.constant 1 : i32
    %123 = vector.broadcast %c1_i32_47 : i32 to vector<1x256xi32>
    %124 = arith.addi %37, %123 : vector<1x256xi32>
    %c16_i32_48 = arith.constant 16 : i32
    %125 = vector.broadcast %c16_i32_48 : i32 to vector<1x256xi32>
    %126 = arith.cmpi slt, %124, %125 : vector<1x256xi32>
    %127 = arith.andi %122, %126 : vector<1x256xi1>
    %cst_49 = arith.constant 0.000000e+00 : f32
    %128 = vector.broadcast %cst_49 : f32 to vector<1x256xf32>
    %129 = arith.select %127, %118, %128 : vector<1x256xi1>, vector<1x256xf32>
    %130 = vector.extract_strided_slice %20 {offsets = [0, 5], sizes = [7, 1], strides = [1, 1]} : vector<7x7xf32> to vector<7x1xf32>
    %131 = vector.broadcast %130 : vector<7x1xf32> to vector<7x256xf32>
    %132 = arith.mulf %19, %131 : vector<7x256xf32>
    %cst_50 = arith.constant dense<0.000000e+00> : vector<256xf32>
    %133 = vector.multi_reduction <add>, %132, %cst_50 [0] : vector<7x256xf32> to vector<256xf32>
    %134 = vector.shape_cast %133 : vector<256xf32> to vector<1x256xf32>
    %135 = vector.extract_strided_slice %134 {offsets = [0, 2], sizes = [1, 254], strides = [1, 1]} : vector<1x256xf32> to vector<1x254xf32>
    %136 = vector.extract_strided_slice %134 {offsets = [0, 0], sizes = [1, 2], strides = [1, 1]} : vector<1x256xf32> to vector<1x2xf32>
    %137 = tpu.concatenate %135, %136 in 1 : vector<1x254xf32>, vector<1x2xf32> -> vector<1x256xf32>
    %c2_i32 = arith.constant 2 : i32
    %138 = vector.broadcast %c2_i32 : i32 to vector<1x256xi32>
    %139 = arith.addi %37, %138 : vector<1x256xi32>
    %c0_i32_51 = arith.constant 0 : i32
    %140 = vector.broadcast %c0_i32_51 : i32 to vector<1x256xi32>
    %141 = arith.cmpi sge, %139, %140 : vector<1x256xi32>
    %c2_i32_52 = arith.constant 2 : i32
    %142 = vector.broadcast %c2_i32_52 : i32 to vector<1x256xi32>
    %143 = arith.addi %37, %142 : vector<1x256xi32>
    %c16_i32_53 = arith.constant 16 : i32
    %144 = vector.broadcast %c16_i32_53 : i32 to vector<1x256xi32>
    %145 = arith.cmpi slt, %143, %144 : vector<1x256xi32>
    %146 = arith.andi %141, %145 : vector<1x256xi1>
    %cst_54 = arith.constant 0.000000e+00 : f32
    %147 = vector.broadcast %cst_54 : f32 to vector<1x256xf32>
    %148 = arith.select %146, %137, %147 : vector<1x256xi1>, vector<1x256xf32>
    %149 = vector.extract_strided_slice %20 {offsets = [0, 6], sizes = [7, 1], strides = [1, 1]} : vector<7x7xf32> to vector<7x1xf32>
    %150 = vector.broadcast %149 : vector<7x1xf32> to vector<7x256xf32>
    %151 = arith.mulf %19, %150 : vector<7x256xf32>
    %cst_55 = arith.constant dense<0.000000e+00> : vector<256xf32>
    %152 = vector.multi_reduction <add>, %151, %cst_55 [0] : vector<7x256xf32> to vector<256xf32>
    %153 = vector.shape_cast %152 : vector<256xf32> to vector<1x256xf32>
    %154 = vector.extract_strided_slice %153 {offsets = [0, 3], sizes = [1, 253], strides = [1, 1]} : vector<1x256xf32> to vector<1x253xf32>
    %155 = vector.extract_strided_slice %153 {offsets = [0, 0], sizes = [1, 3], strides = [1, 1]} : vector<1x256xf32> to vector<1x3xf32>
    %156 = tpu.concatenate %154, %155 in 1 : vector<1x253xf32>, vector<1x3xf32> -> vector<1x256xf32>
    %c3_i32 = arith.constant 3 : i32
    %157 = vector.broadcast %c3_i32 : i32 to vector<1x256xi32>
    %158 = arith.addi %37, %157 : vector<1x256xi32>
    %c0_i32_56 = arith.constant 0 : i32
    %159 = vector.broadcast %c0_i32_56 : i32 to vector<1x256xi32>
    %160 = arith.cmpi sge, %158, %159 : vector<1x256xi32>
    %c3_i32_57 = arith.constant 3 : i32
    %161 = vector.broadcast %c3_i32_57 : i32 to vector<1x256xi32>
    %162 = arith.addi %37, %161 : vector<1x256xi32>
    %c16_i32_58 = arith.constant 16 : i32
    %163 = vector.broadcast %c16_i32_58 : i32 to vector<1x256xi32>
    %164 = arith.cmpi slt, %162, %163 : vector<1x256xi32>
    %165 = arith.andi %160, %164 : vector<1x256xi1>
    %cst_59 = arith.constant 0.000000e+00 : f32
    %166 = vector.broadcast %cst_59 : f32 to vector<1x256xf32>
    %167 = arith.select %165, %156, %166 : vector<1x256xi1>, vector<1x256xf32>
    %168 = arith.addf %56, %75 : vector<1x256xf32>
    %169 = arith.addf %94, %110 : vector<1x256xf32>
    %170 = arith.addf %129, %148 : vector<1x256xf32>
    %171 = arith.addf %168, %169 : vector<1x256xf32>
    %172 = arith.addf %170, %167 : vector<1x256xf32>
    %173 = arith.addf %171, %172 : vector<1x256xf32>
    %174 = arith.negf %173 : vector<1x256xf32>
    %175 = math.exp %174 : vector<1x256xf32>
    %cst_60 = arith.constant 1.000000e+00 : f32
    %176 = vector.broadcast %cst_60 : f32 to vector<1x256xf32>
    %177 = arith.addf %176, %175 : vector<1x256xf32>
    %178 = arith.divf %176, %177 : vector<1x256xf32>
    %c0_61 = arith.constant 0 : index
    %c0_62 = arith.constant 0 : index
    %c0_63 = arith.constant 0 : index
    %179 = vector.load %arg7[%c0_61, %c0_62, %c0_63] : memref<1x1x256xf32, #tpu.memory_space<vmem>>, vector<1x1x256xf32>
    %180 = vector.shape_cast %179 : vector<1x1x256xf32> to vector<1x256xf32>
    %181 = vector.shape_cast %178 : vector<1x256xf32> to vector<1x1x256xf32>
    tpu.vector_store %arg7[%c0_61, %c0_62, %c0_63], %181 {strides = array<i32>} : memref<1x1x256xf32, #tpu.memory_space<vmem>>, vector<1x1x256xf32>,
    %182 = vector.broadcast %178 : vector<1x256xf32> to vector<32x256xf32>
    %183 = arith.mulf %1, %182 : vector<32x256xf32>
    %184 = arith.addf %1, %183 : vector<32x256xf32>
    %cst_64 = arith.constant dense<0xFF800000> : vector<32xf32>
    %185 = vector.multi_reduction <maximumf>, %184, %cst_64 [1] : vector<32x256xf32> to vector<32xf32>
    %186 = vector.shape_cast %185 : vector<32xf32> to vector<32x1xf32>
    %c0_65 = arith.constant 0 : index
    %c0_66 = arith.constant 0 : index
    %187 = vector.load %arg4[%c0_65, %c0_66] : memref<32x2xf32, #tpu.memory_space<vmem>>, vector<32x2xf32>
    %c0_67 = arith.constant 0 : index
    %c0_68 = arith.constant 0 : index
    %188 = vector.load %arg5[%c0_67, %c0_68] : memref<32x2xf32, #tpu.memory_space<vmem>>, vector<32x2xf32>
    %189 = vector.broadcast %186 : vector<32x1xf32> to vector<32x2xf32>
    %190 = arith.mulf %187, %189 : vector<32x2xf32>
    %cst_69 = arith.constant dense<0.000000e+00> : vector<2xf32>
    %191 = vector.multi_reduction <add>, %190, %cst_69 [0] : vector<32x2xf32> to vector<2xf32>
    %192 = vector.shape_cast %191 : vector<2xf32> to vector<1x2xf32>
    %cst_70 = arith.constant 0.000000e+00 : f32
    %193 = vector.broadcast %cst_70 : f32 to vector<1x2xf32>
    %194 = arith.maximumf %192, %193 : vector<1x2xf32>
    %195 = vector.broadcast %194 : vector<1x2xf32> to vector<32x2xf32>
    %196 = arith.mulf %188, %195 : vector<32x2xf32>
    %cst_71 = arith.constant dense<0.000000e+00> : vector<32xf32>
    %197 = vector.multi_reduction <add>, %196, %cst_71 [1] : vector<32x2xf32> to vector<32xf32>
    %198 = vector.shape_cast %197 : vector<32xf32> to vector<32x1xf32>
    %199 = arith.negf %198 : vector<32x1xf32>
    %200 = math.exp %199 : vector<32x1xf32>
    %cst_72 = arith.constant 1.000000e+00 : f32
    %201 = vector.broadcast %cst_72 : f32 to vector<32x1xf32>
    %202 = arith.addf %201, %200 : vector<32x1xf32>
    %203 = arith.divf %201, %202 : vector<32x1xf32>
    %204 = vector.broadcast %203 : vector<32x1xf32> to vector<32x256xf32>
    %205 = arith.mulf %1, %204 : vector<32x256xf32>
    %c0_73 = arith.constant 0 : index
    %c0_74 = arith.constant 0 : index
    %c0_75 = arith.constant 0 : index
    %206 = vector.load %arg6[%c0_73, %c0_74, %c0_75] : memref<1x32x256xf32, #tpu.memory_space<vmem>>, vector<1x32x256xf32>
    %207 = vector.shape_cast %206 : vector<1x32x256xf32> to vector<32x256xf32>
    %208 = vector.shape_cast %205 : vector<32x256xf32> to vector<1x32x256xf32>
    tpu.vector_store %arg6[%c0_73, %c0_74, %c0_75], %208 {strides = array<i32>} : memref<1x32x256xf32, #tpu.memory_space<vmem>>, vector<1x32x256xf32>,
    return
  }
  func.func @transform_0(%arg0: i32) -> (i32, i32) {
    %c0_i32 = arith.constant 0 : i32
    %c0_i32_0 = arith.constant 0 : i32
    %c0_i32_1 = arith.constant 0 : i32
    return %c0_i32, %c0_i32_0 : i32, i32
  }
  func.func @transform_1(%arg0: i32) -> (i32, i32, i32) {
    %c0_i32 = arith.constant 0 : i32
    %c0_i32_0 = arith.constant 0 : i32
    %c0_i32_1 = arith.constant 0 : i32
    return %arg0, %c0_i32, %c0_i32_0 : i32, i32, i32
  }
  func.func @transform_2(%arg0: i32) -> (i32, i32, i32) {
    %c0_i32 = arith.constant 0 : i32
    %c0_i32_0 = arith.constant 0 : i32
    %c0_i32_1 = arith.constant 0 : i32
    return %arg0, %c0_i32, %c0_i32_0 : i32, i32, i32
  }
  func.func @transform_3(%arg0: i32) -> (i32, i32) {
    %c0_i32 = arith.constant 0 : i32
    %c0_i32_0 = arith.constant 0 : i32
    %c0_i32_1 = arith.constant 0 : i32
    return %c0_i32, %c0_i32_0 : i32, i32
  }
  func.func @transform_4(%arg0: i32) -> (i32, i32) {
    %c0_i32 = arith.constant 0 : i32
    %c0_i32_0 = arith.constant 0 : i32
    %c0_i32_1 = arith.constant 0 : i32
    return %c0_i32, %c0_i32_0 : i32, i32
  }
  func.func @transform_5(%arg0: i32) -> (i32, i32, i32) {
    %c0_i32 = arith.constant 0 : i32
    %c0_i32_0 = arith.constant 0 : i32
    %c0_i32_1 = arith.constant 0 : i32
    return %arg0, %c0_i32, %c0_i32_0 : i32, i32, i32
  }
  func.func @transform_6(%arg0: i32) -> (i32, i32, i32) {
    %c0_i32 = arith.constant 0 : i32
    %c0_i32_0 = arith.constant 0 : i32
    %c0_i32_1 = arith.constant 0 : i32
    return %arg0, %c0_i32, %c0_i32_0 : i32, i32, i32
  }
}

</mosaic_0001>

<bundles_post_ra>
// kernel: tpu_custom_call.1
= control target key start
LH: loop header
LB: loop body
LE: loop exit
PB: predicated region body
PF: predicated region fallthrough
CT: control target
= control target key end

     0   :  { %12 = vsyncpa [#allocation4], 0  ;;  %s2099_s0 = inlined_call_operand.vmem [shape: f32[7,7], index: 0, kind: input, shape index: {}]   ;;  %s2100_s1 = inlined_call_operand.hbm [shape: f32[2,32,256], index: 1, kind: input, shape index: {}]   ;;  %s2101_s2 = inlined_call_operand.vmem [shape: f32[2,1,256], index: 2, kind: input, shape index: {}]   ;;  %s2102_s3 = inlined_call_operand.vmem [shape: f32[32,2], index: 3, kind: input, shape index: {}]   ;;  %s2103_s4 = inlined_call_operand.vmem [shape: f32[32,2], index: 4, kind: input, shape index: {}]   ;;  %s2104_s5 = inlined_call_operand.hbm [shape: f32[2,32,256], index: 5, kind: output, shape index: {0}]   ;;  %s2105_s6 = inlined_call_operand.hbm [shape: f32[2,1,256], index: 6, kind: output, shape index: {1}]  }
   0x1   :  { %14 = vsyncpa [#allocation4 + $0x1], 0 }
   0x2   :  { %15 = vsyncpa [#allocation5], 0 }
   0x3   :  { %17 = vsyncpa [#allocation5 + $0x1], 0 }
   0x4   :  { %18 = vsyncpa [#allocation8], 0 }
   0x5   :  { %20 = vsyncpa [#allocation8 + $0x1], 0  ;;  %s1557_s21 = smov 0   ;;  %s1559_s22 = smov 0  }
   0x6   :  { %s1561_s23 = smov 0   ;;  %s1563_s24 = smov 0  }
   0x7 LB: > { %s1578_s25 = sadd.s32 4294967295, %s1492_s24   ;;  %s1227_s26 = sadd.s32 4294967294, %s1492_s24   ;;  %s1492_s24 = sphi %s1563_s24, %s2154_s24   ;;  %s1488_s23 = sphi %s1561_s23, %s2153_s23   ;;  %s1484_s22 = sphi %s1559_s22, %s2152_s22   ;;  %s1480_s21 = sphi %s1557_s21, %s2151_s21  }
   0x8   : > { %s1582_s27 = sadd.s32 1, %s1492_s24   ;;  %s54_s28 = sadd.s32 1, %s1488_s23 }
   0x9   : > { %s51_s29 = ssub.s32 %s1492_s24, %s1582_s27  ;;  %p61_p0 = scmp.ne.s32.totalorder %s1488_s23, %s1484_s22 }
   0xa   : > { %p52_p1 = scmp.eq.s32.totalorder %s51_s29, 0  ;;  %p62_p2 = scmp.eq.s32.totalorder %s1492_s24, 0 }
   0xb   : > { %p67_p3 = scmp.ne.s32.totalorder %s1484_s22, %s1480_s21  ;;  %p68_p4 = scmp.eq.s32.totalorder %s1578_s25, 0 }
   0xc   : > { %s1594_s30 = scalar_select %p52_p1, %s1488_s23, %s54_s28  }
   0xd   : > { %p1596_p5 = por %p62_p2, %p61_p0  ;;  %p1600_p6 = por %p68_p4, %p67_p3 }
   0xe   : > { %p159_p7 = scmp.eq.s32.totalorder %s1578_s25, 1  ;;  %p165_p8 = scmp.eq.s32.totalorder %s1227_s26, 1 }
   0xf   : > { %s2111_s8 = scalar_select %p1600_p6, 1, 0 }
  0x10   : > { %p1272_p10 = scmp.lt.s32.totalorder %s1492_s24, 2  ;;  %p1607_p11 = por %p159_p7, %p61_p0 }
  0x11   : > { %p1611_p12 = por %p165_p8, %p67_p3  ;;  %s220_s11 = sand.u32 1, %s1488_s23  }
  0x12   : > { %s2112_s9 = scalar_select %p1607_p11, 1, 0 }
  0x13   : > { %s2113_s10 = scalar_select %p1611_p12, 1, 0 }
  0x14   : > { %s1252_s12 = sshll.u32 %s1492_s24, 10  ;;  %s1230_s13 = sshll.u32 %s220_s11, 6 }
  0x15   : > { %s1620_s16 = scalar_lea.hbm %s2100_s1, %s1252_s12  ;;  %s224_s17 = scalar_lea.vmem [#allocation3], %s1230_s13 }
  0x16   : > { %s231_s18 = sshll.u32 %s224_s17, 4  ;;  %p1624_p13 = pnand %p1272_p10, %p1596_p5  ;;  %s1628_s18 = int_to_ptr.vmem [resolvable:$true] %s231_s18 }
  0x17   : > { %s1630_s20 = scalar_lea.sflag [#allocation4], %s220_s11  ;;  %s1370_s26 = scalar_lea.hbm %s1620_s16, 1024 }
  0x18   : > { %p1371_p0 = scmp.ne.s32.totalorder %s1620_s16, %s1370_s26  ;;  %p1372_p1 = pneg %p1624_p13 }
  0x19   : > { %s1375_s12 = scalar_lea.hbm %s2100_s1, 2048  ;;  %p1376_p4 = scmp.lt.s32.totalorder %s1620_s16, %s2100_s1 }
  0x1a   : > { %p1373_p2 = pnand %p1372_p1, %p1371_p0  ;;  %p1377_p5 = scmp.lt.s32.totalorder %s1375_s12, %s1370_s26 }
  0x1c   : > { %p1374_p3 = pneg %p1373_p2  ;;  %p1378_p7 = por %p1377_p5, %p1376_p4 }
  0x1e   : > { %p1379_p8 = pnand %p1378_p7, %p1374_p3 }
  0x20   : > { %1382 = shalt.err (!%p1379_p8)
}
  0x21   : > { %s1383_s11 = scalar_lea.vmem %s1628_s18, 1024  ;;  %s1494_s14 = smov [#allocation3]  }
  0x22   : > { %p1384_p10 = scmp.ne.s32.totalorder %s1628_s18, %s1383_s11  ;;  %s1388_s15 = sshll.u32 %s1494_s14, 4  ;;  %s1389_s15 = int_to_ptr.vmem [resolvable:$false] %s1388_s15 }
  0x23   : > { %s1390_s17 = scalar_lea.vmem %s1389_s15, 2048  ;;  %p1391_p2 = scmp.lt.s32.totalorder %s1628_s18, %s1389_s15 }
  0x24   : > { %p1386_p9 = pnand %p1384_p10, %p1372_p1  ;;  %p1392_p12 = scmp.lt.s32.totalorder %s1390_s17, %s1383_s11 }
  0x26   : > { %p1387_p0 = pneg %p1386_p9  ;;  %p1393_p11 = por %p1392_p12, %p1391_p2 }
  0x28   : > { %p1394_p6 = pnand %p1393_p11, %p1387_p0 }
  0x2a   : > { %1397 = shalt.err (!%p1394_p6)
}
  0x2b   : > { %s1495_s26 = smov 256   ;;  %s1496_s28 = smov 16  }
  0x2c   : > { %1264 = dma.hbm_to_vmem [thread:$0]  (!%p1624_p13), %s1620_s16, 1024, %s1628_s18, %s1630_s20, %s1495_s26, %s1495_s26, %s1496_s28  }
  0x2d   : > { %p1233_p9 = scmp.ge.s32.totalorder %s1492_s24, 1  ;;  %p246_p1 = scmp.lt.s32.totalorder %s1492_s24, 3 }
  0x2f   : > { %p247_p3 = pnand %p1233_p9, %p246_p1 }
  0x30   : > { %s1654_s29 = sand.u32 (!%p247_p3), 1, %s1484_s22   ;;  %p2115_p6 = scmp.ne.s32.totalorder (!%p247_p3), %s2111_s8, 0 }
  0x31   : > { %250 = sbr.rel (%p247_p3) target bundleno = 833 (0x341), region = 40  ;;  %s2109_s12 = sshll.u32 (!%p247_p3), %s1654_s29, 6 }
  0x32   : > { %s253_s7 = scalar_lea.sflag (!%p247_p3), [#allocation4], %s1654_s29  ;;  %s1660_s13 = scalar_lea.vmem (!%p247_p3), [#allocation3], %s2109_s12 }
  0x36   : > { %1467 = dma.done.wait (%p2115_p6), %s253_s7, 1024  }
  0x37   : > { %1469 = vsyncadd (%p2115_p6), %s253_s7, 4294966272  ;;  %p294_p11 = scmp.lt.s32.totalorder %s1578_s25, 1  ;;  %v1497_v0 = vmov 1   ;;  %v1498_v1 = vmov 0   ;;  %v308_v2 = vlaneseq  ;;  %v1499_v4 = vmov 0.0   ;;  %v1689_v8 = vld [vmem:[%s1660_s13] sm:$0xff] }
  0x38   : > { %1332 = vset.pattern.permute.xlu1 %v1497_v0  ;;  %1331 = vset.pattern.permute.xlu0 %v1498_v1  ;;  %v1675_v5 = vld [vmem:[%s2099_s0] sm:$0x7f]  ;;  %v1692_v9 = vld [vmem:[%s1660_s13 + $0x8] sm:$0xff]  ;;  %v1695_v10 = vld [vmem:[%s1660_s13 + $0x10] sm:$0xff]  ;;  %v1500_v18 = vmov 2   ;;  %v1501_v19 = vmov 4  }
  0x39   : > { %s295_s16 = scalar_select %p294_p11, %s1578_s25, 1  ;;  %v1669_v3 = vshrl.u32 %v308_v2, 7  ;;  %vm346_vm0 = vcmp.lt.s32.totalorder %v308_v2, 128  ;;  %593 = vperm.xlu1 %1332, %v1675_v5   ;;  %535 = vperm.xlu0 %1331, %v1675_v5   ;;  %v1698_v11 = vld [vmem:[%s1660_s13 + $0x18] sm:$0xff]  ;;  %v1701_v13 = vld [vmem:[%s1660_s13 + $0x20] sm:$0xff]  ;;  %v1704_v14 = vld [vmem:[%s1660_s13 + $0x28] sm:$0xff] }
  0x3a   : > { %348 = vst.msk [vmem:[#allocation2] sm:$0x1] %vm346_vm0, %v1499_v4  ;;  %349 = vst.msk [vmem:[#allocation2 + $0x3] sm:$0x1] %vm346_vm0, %v1499_v4  ;;  %v1707_v15 = vld [vmem:[%s1660_s13 + $0x30] sm:$0xff]  ;;  %v1712_v20 = vld [vmem:[%s1660_s13 + $0x38] sm:$0xff] }
  0x3b   : > { %s1237_s8 = sshll.u32 %s295_s16, 1  ;;  %v1681_v6 = vsub.s32 0, %v1669_v3  ;;  %v1684_v7 = vsub.s32 1, %v1669_v3  ;;  %v1502_v32 = vmov 5   ;;  %v1503_v34 = vmov 6   ;;  %s1506_s15 = smov 112  }
  0x3c   : > { %s297_s14 = scalar_lea.vmem %s2101_s2, %s1237_s8  ;;  %v1504_v39 = vmov 3   ;;  %v1505_v42 = vmov 1966171168   ;;  %vm1731_vm1 = vcmp.lt.s32.totalorder %v308_v2, 256  ;;  %v385_v58 = vsub.s32 2, %v1669_v3  ;;  %s1507_s17 = smov 96  }
  0x3d   : > { %v306_v12 = vld [vmem:[%s297_s14] sm:$0x3]  ;;  %1333 = vset.pattern.permute.xlu1 %v1500_v18  ;;  %1334 = vset.pattern.permute.xlu0 %v1501_v19  ;;  %v354_v43 = vunpack.c.l.s4 %v1505_v42  ;;  %s1508_s26 = smov 80   ;;  %s1509_s28 = smov 64   ;;  %vm396_vm2 = vcmask 916480   ;;  %vm408_vm3 = vcmask 785408  }
  0x3e   : > { %v311_v16 = vrot.slane %v306_v12, %v1681_v6  ;;  %v315_v17 = vrot.slane %v306_v12, %v1684_v7  ;;  %648 = vperm.xlu1 %1333, %v1675_v5   ;;  %752 = vperm.xlu0 %1334, %v1675_v5   ;;  %s1510_s7 = smov 48   ;;  %s1511_s16 = smov 32   ;;  %vm481_vm4 = vcmask 1040384   ;;  %vm485_vm5 = vcmask 1041408  }
  0x3f   : > { %v355_v48 = vunpack.c.0.s8 %v354_v43  ;;  %vm489_vm6 = vcmask 1042432   ;;  %vm493_vm7 = vcmask 1043456   ;;  %vm497_vm8 = vcmask 1044480   ;;  %s1512_s8 = smov 47   ;;  %s1513_s18 = smov 51  }
  0x40   : > { %v318_v21 = vmul.f32 %v311_v16, %v1689_v8  ;;  %v319_v22 = vmul.f32 %v315_v17, %v1692_v9  ;;  %v320_v23 = vmul.f32 %v311_v16, %v1695_v10  ;;  %v321_v24 = vmul.f32 %v315_v17, %v1698_v11  ;;  %s1514_s19 = smov 46   ;;  %s1515_s20 = smov 49  }
  0x41   : > { %v322_v25 = vmul.f32 %v311_v16, %v1701_v13  ;;  %v323_v26 = vmul.f32 %v315_v17, %v1704_v14  ;;  %v324_v27 = vmul.f32 %v311_v16, %v1707_v15  ;;  %v325_v28 = vmul.f32 %v315_v17, %v1712_v20  ;;  %s1516_s11 = smov 50   ;;  %s1517_s14 = smov 45  }
  0x42   : > { %1335 = vset.pattern.permute.xlu1 %v1502_v32  ;;  %1337 = vset.pattern.permute.xlu0 %v1503_v34  ;;  %v1727_v53 = vsub.s32 %v355_v48, %v1669_v3  ;;  %vm501_vm9 = vcmask 1045504   ;;  %vm427_vm10 = vcmask 654336   ;;  %vm451_vm11 = vcmask 523264   ;;  %p2147_p13 = scmp.ne.s32.totalorder %s2112_s9, 0 }
  0x43   : > { %v326_v29 = vmax.f32 %v318_v21, %v322_v25  ;;  %v327_v30 = vmax.f32 %v320_v23, %v324_v27  ;;  %v335_v31 = vmax.f32 %v319_v22, %v323_v26  ;;  %v336_v33 = vmax.f32 %v321_v24, %v325_v28  ;;  %807 = vperm.xlu1 %1335, %v1675_v5  }
  0x44   : > { %vm2108_vm12 = vcmask 392192   ;;  %vm475_vm13 = vcmask 261120   ;;  %vm541_vm14 = vcmask 1047168   ;;  %vm549_vm15 = vcmask 1046528  }
  0x45   : > { %v328_v35 = vmax.f32 %v326_v29, %v327_v30  ;;  %v337_v36 = vmax.f32 %v335_v31, %v336_v33  ;;  %vm557_vm0 = vcmask 653312  }
  0x47   : > { %v329_v37 = vrot.slane %v328_v35, 4  ;;  %v338_v38 = vrot.slane %v337_v36, 4  ;;  %1336 = vset.pattern.permute.xlu1 %v1504_v39 }
  0x48   : > { %703 = vperm.xlu1 %1336, %v1675_v5  }
  0x49   : > { %v330_v40 = vmax.f32 %v328_v35, %v329_v37  ;;  %v339_v41 = vmax.f32 %v337_v36, %v338_v38 }
  0x4b   : > { %v331_v44 = vrot.slane %v330_v40, 2  ;;  %v340_v45 = vrot.slane %v339_v41, 2 }
  0x4d   : > { %v332_v46 = vmax.f32 %v330_v40, %v331_v44  ;;  %v341_v47 = vmax.f32 %v339_v41, %v340_v45 }
  0x4f   : > { %v333_v49 = vrot.slane %v332_v46, 1  ;;  %v342_v50 = vrot.slane %v341_v47, 1 }
  0x51   : > { %v334_v51 = vmax.f32 %v332_v46, %v333_v49  ;;  %v343_v52 = vmax.f32 %v341_v47, %v342_v50 }
  0x53   : > { %v352_v54 = vcombine.low %v334_v51, %v343_v52 }
  0x55   : > { %v359_v55 = vrot.slane %v352_v54, %v1727_v53 }
  0x57   : > { %v366_v57 = vrot.slane %v359_v55, %v1727_v53 }
  0x59   : > { %370 = vst.msk [vmem:[#allocation2 + $0x1] sm:$0x3] %vm1731_vm1, %v366_v57 }
  0x60   : > { %v371_v59 = vld [vmem:[#allocation2] sm:$0x7] }
  0x61   : > { %v1739_v60 = vrot.slane %v371_v59, %v385_v58  ;;  %v378_v61 = vrot.slane %v371_v59, %v1681_v6  ;;  %v1744_v62 = vrot.slane %v371_v59, %v1684_v7  ;;  %v372_v63 = vld [vmem:[#allocation2 + $0x1] sm:$0x3] }
  0x62   : > { %v422_v0 = vrot.slane %v372_v63, %v1684_v7  ;;  %v418_v1 = vrot.slane %v372_v63, %v1681_v6  ;;  %v373_v3 = vld [vmem:[#allocation2 + $0x1] sm:$0x7] }
  0x63   : > { %394 = vrot.lane.b32.xlu1 %v1739_v60, %s1506_s15  ;;  %390 = vrot.lane.b32.xlu0 %v378_v61, %s1506_s15  ;;  %v436_v4 = vrot.slane %v373_v3, %v1681_v6  ;;  %v440_v12 = vrot.slane %v373_v3, %v1684_v7  ;;  %v444_v16 = vrot.slane %v373_v3, %v385_v58 }
  0x67   : > { %402 = vrot.lane.b32.xlu1 %v378_v61, %s1507_s17  ;;  %392 = vrot.lane.b32.xlu0 %v1744_v62, %s1506_s15  ;;  %s1236_s15 = sshll.u32 %s1654_s29, 1 }
  0x6b   : > { %406 = vrot.lane.b32.xlu1 %v1739_v60, %s1507_s17  ;;  %404 = vrot.lane.b32.xlu0 %v1744_v62, %s1507_s17  ;;  %s1983_s17 = scalar_lea.vmem [#allocation7], %s1236_s15  ;;  %s1083_s15 = scalar_lea.sflag [#allocation8], %s1654_s29 }
  0x6f   : > { %425 = vrot.lane.b32.xlu1 %v422_v0, %s1508_s26  ;;  %423 = vrot.lane.b32.xlu0 %v418_v1, %s1508_s26 }
  0x73   : > { %445 = vrot.lane.b32.xlu1 %v436_v4, %s1509_s28  ;;  %447 = vrot.lane.b32.xlu0 %v440_v12, %s1509_s28 }
  0x77   : > { %449 = vrot.lane.b32.xlu1 %v444_v16, %s1509_s28  ;;  %457 = vrot.lane.b32.xlu0 %v436_v4, %s1510_s7  ;;  %s1518_s28 = smov [#allocation7]  }
  0x7b   : > { %459 = vrot.lane.b32.xlu1 %v440_v12, %s1510_s7  ;;  %461 = vrot.lane.b32.xlu0 %v444_v16, %s1510_s7 }
  0x7f   : > { %469 = vrot.lane.b32.xlu1 %v436_v4, %s1511_s16  ;;  %862 = vperm.xlu0 %1337, %v1675_v5  }
  0x83   : > { %471 = vrot.lane.b32.xlu1 %v440_v12, %s1511_s16  ;;  %473 = vrot.lane.b32.xlu0 %v444_v16, %s1511_s16 }
  0xb4   : > { %v1757_v17 = vpop.permute.xlu1 %593  ;;  %v1763_v19 = vpop.permute.xlu0 %535 }
  0xb9   : > { %v1759_v7 = vpop.permute.xlu1 %648  ;;  %v1767_v22 = vpop.permute.xlu0 %752 }
  0xbe   : > { %v1761_v18 = vpop.permute.xlu1 %807 }
  0xc3   : > { %v1765_v21 = vpop.permute.xlu1 %703 }
  0xd5   : > { %v395_v23 = vpop.permute.xlu1 %394  ;;  %v391_v24 = vpop.permute.xlu0 %390 }
  0xd6   : > { %v484_v54 = vsel %vm481_vm4, %v1739_v60, %v395_v23 }
  0xd9   : > { %v403_v25 = vpop.permute.xlu1 %402  ;;  %v393_v26 = vpop.permute.xlu0 %392 }
  0xda   : > { %v397_v33 = vsel %vm396_vm2, %v391_v24, %v393_v26  ;;  %v398_v44 = vsel %vm396_vm2, %v393_v26, %v395_v23 }
  0xdb   : > { %v482_v35 = vsel %vm481_vm4, %v378_v61, %v397_v33  ;;  %v483_v50 = vsel %vm481_vm4, %v1744_v62, %v398_v44  ;;  %vm630_vm4 = vcmask 408576  }
  0xdd   : > { %v407_v27 = vpop.permute.xlu1 %406  ;;  %v405_v5 = vpop.permute.xlu0 %404 }
  0xde   : > { %v409_v34 = vsel %vm408_vm3, %v403_v25, %v405_v5  ;;  %v410_v45 = vsel %vm408_vm3, %v405_v5, %v407_v27  ;;  %v488_v1 = vsel %vm485_vm5, %v484_v54, %v407_v27 }
  0xdf   : > { %v486_v37 = vsel %vm485_vm5, %v482_v35, %v409_v34  ;;  %v487_v55 = vsel %vm485_vm5, %v483_v50, %v410_v45  ;;  %vm849_vm5 = vcmask 1031168  }
  0xe1   : > { %v426_v28 = vpop.permute.xlu1 %425  ;;  %v424_v29 = vpop.permute.xlu0 %423 }
  0xe2   : > { %v490_v39 = vsel %vm489_vm6, %v486_v37, %v424_v29  ;;  %v428_v46 = vsel %vm427_vm10, %v424_v29, %v426_v28  ;;  %v492_v26 = vsel %vm489_vm6, %v488_v1, %v426_v28 }
  0xe3   : > { %v491_v59 = vsel %vm489_vm6, %v487_v55, %v428_v46  ;;  %vm904_vm6 = vcmask 1022976  }
  0xe5   : > { %v446_v30 = vpop.permute.xlu1 %445  ;;  %v448_v31 = vpop.permute.xlu0 %447 }
  0xe6   : > { %v494_v40 = vsel %vm493_vm7, %v490_v39, %v446_v30  ;;  %v452_v51 = vsel %vm451_vm11, %v446_v30, %v448_v31 }
  0xe7   : > { %v495_v62 = vsel %vm493_vm7, %v491_v59, %v452_v51 }
  0xe9   : > { %v450_v32 = vpop.permute.xlu1 %449  ;;  %v458_v38 = vpop.permute.xlu0 %457 }
  0xea   : > { %v498_v41 = vsel %vm497_vm8, %v494_v40, %v458_v38  ;;  %v453_v4 = vsel %vm451_vm11, %v448_v31, %v450_v32  ;;  %vm2121_vm11 = vcmask 7168  }
  0xeb   : > { %v496_v27 = vsel %vm493_vm7, %v492_v26, %v453_v4  ;;  %vm685_vm7 = vcmask 400384  }
  0xed   : > { %v460_v36 = vpop.permute.xlu1 %459  ;;  %v462_v52 = vpop.permute.xlu0 %461 }
  0xee   : > { %v464_v57 = vsel %vm2108_vm12, %v458_v38, %v460_v36  ;;  %v465_v23 = vsel %vm2108_vm12, %v460_v36, %v462_v52  ;;  %vm2119_vm12 = vcmask 384000  }
  0xef   : > { %v499_v60 = vsel %vm497_vm8, %v495_v62, %v464_v57  ;;  %v500_v31 = vsel %vm497_vm8, %v496_v27, %v465_v23  ;;  %vm2123_vm2 = vmmov %vm2119_vm12 }
  0xf1   : > { %v470_v42 = vpop.permute.xlu1 %469 }
  0xf2   : > { %v1777_v43 = vsel %vm501_vm9, %v498_v41, %v470_v42 }
  0xf3   : > { %v538_v48 = vmul.f32 %v1763_v19, %v1777_v43  ;;  %v596_v49 = vmul.f32 %v1757_v17, %v1777_v43  ;;  %v651_v58 = vmul.f32 %v1759_v7, %v1777_v43  ;;  %v1817_v33 = vmul.f32 %v1767_v22, %v1777_v43 }
  0xf4   : > { %v1821_v28 = vmul.f32 %v1761_v18, %v1777_v43  ;;  %v1830_v37 = vmul.f32 %v1765_v21, %v1777_v43 }
  0xf5   : > { %v472_v47 = vpop.permute.xlu1 %471  ;;  %v542_v63 = vsel %vm541_vm14, %v538_v48, 0.0  ;;  %v599_v0 = vsel %vm541_vm14, %v596_v49, 0.0  ;;  %v654_v16 = vsel %vm541_vm14, %v651_v58, 0.0 }
  0xf6   : > { %v476_v61 = vsel %vm475_vm13, %v470_v42, %v472_v47  ;;  %v543_v24 = vrot.slane %v542_v63, 4  ;;  %v600_v25 = vrot.slane %v599_v0, 4  ;;  %v655_v30 = vrot.slane %v654_v16, 4 }
  0xf7   : > { %v1805_v12 = vsel %vm501_vm9, %v499_v60, %v476_v61 }
  0xf8   : > { %v539_v29 = vmul.f32 %v1763_v19, %v1805_v12  ;;  %v544_v35 = vadd.f32 %v543_v24, %v542_v63  ;;  %v1826_v36 = vadd.f32 %v600_v25, %v599_v0  ;;  %v1845_v46 = vadd.f32 %v655_v30, %v654_v16 }
  0xf9   : > { %v597_v58 = vmul.f32 %v1757_v17, %v1805_v12  ;;  %v756_v59 = vmul.f32 %v1767_v22, %v1805_v12 }
  0xfa   : > { %v1801_v3 = vpop.permute.xlu0 %862  ;;  %v550_v45 = vsel %vm549_vm15, %v539_v29, 0.0  ;;  %v545_v60 = vrot.slane %v544_v35, 2 }
  0xfb   : > { %v551_v16 = vrot.slane %v550_v45, 4  ;;  %v606_v29 = vsel %vm549_vm15, %v597_v58, 0.0  ;;  %v657_v58 = vrot.slane %v1845_v46, 2 }
  0xfe   : > { %v474_v5 = vpop.permute.xlu0 %473 }
  0xff   : > { %v477_v32 = vsel %vm475_vm13, %v472_v47, %v474_v5  ;;  %vm2118_vm13 = vcmask 416768  }
 0x100   : > { %v1824_v34 = vsel %vm501_vm9, %v500_v31, %v477_v32  ;;  %vm2122_vm9 = vcmask 375808  }
 0x101   : > { %v757_v38 = vmul.f32 %v1767_v22, %v1824_v34  ;;  %v540_v39 = vmul.f32 %v1763_v19, %v1824_v34  ;;  %v812_v40 = vmul.f32 %v1761_v18, %v1824_v34  ;;  %v653_v41 = vmul.f32 %v1759_v7, %v1824_v34 }
 0x102   : > { %v598_v42 = vmul.f32 %v1757_v17, %v1824_v34  ;;  %v708_v44 = vmul.f32 %v1765_v21, %v1824_v34  ;;  %v765_v17 = vsel %vm549_vm15, %v756_v59, 0.0 }
 0x103   : > { %v772_v47 = vsel %vm557_vm0, %v757_v38, 0.0  ;;  %v558_v19 = vsel %vm557_vm0, %v540_v39, 0.0  ;;  %v827_v48 = vsel %vm557_vm0, %v812_v40, 0.0  ;;  %v668_v49 = vsel %vm557_vm0, %v653_v41, 0.0 }
 0x104   : > { %v773_v50 = vrot.slane %v772_v47, 4  ;;  %v559_v51 = vrot.slane %v558_v19, 4  ;;  %v828_v52 = vrot.slane %v827_v48, 4  ;;  %v669_v54 = vrot.slane %v668_v49, 4 }
 0x105   : > { %v613_v55 = vsel %vm557_vm0, %v598_v42, 0.0  ;;  %v723_v57 = vsel %vm557_vm0, %v708_v44, 0.0  ;;  %v602_v39 = vrot.slane %v1826_v36, 2  ;;  %v652_v40 = vmul.f32 %v1759_v7, %v1805_v12 }
 0x106   : > { %v774_v61 = vadd.f32 %v773_v50, %v772_v47  ;;  %v560_v62 = vadd.f32 %v559_v51, %v558_v19  ;;  %v829_v63 = vadd.f32 %v828_v52, %v827_v48  ;;  %v670_v0 = vadd.f32 %v669_v54, %v668_v49 }
 0x107   : > { %v614_v1 = vrot.slane %v613_v55, 4  ;;  %v724_v4 = vrot.slane %v723_v57, 4  ;;  %v811_v41 = vmul.f32 %v1761_v18, %v1805_v12  ;;  %v552_v47 = vadd.f32 %v551_v16, %v550_v45 }
 0x108   : > { %v775_v23 = vrot.slane %v774_v61, 2  ;;  %v561_v24 = vrot.slane %v560_v62, 2  ;;  %v830_v25 = vrot.slane %v829_v63, 2  ;;  %v671_v26 = vrot.slane %v670_v0, 2 }
 0x109   : > { %v615_v27 = vadd.f32 %v614_v1, %v613_v55  ;;  %v725_v5 = vadd.f32 %v724_v4, %v723_v57  ;;  %v607_v19 = vrot.slane %v606_v29, 4  ;;  %v546_v49 = vadd.f32 %v545_v60, %v544_v35 }
 0x10a   : > { %v776_v30 = vadd.f32 %v775_v23, %v774_v61  ;;  %v562_v22 = vadd.f32 %v561_v24, %v560_v62  ;;  %v831_v31 = vadd.f32 %v830_v25, %v829_v63  ;;  %v672_v32 = vadd.f32 %v671_v26, %v670_v0 }
 0x10b   : > { %v616_v38 = vrot.slane %v615_v27, 2  ;;  %v726_v50 = vrot.slane %v725_v5, 2  ;;  %v766_v51 = vrot.slane %v765_v17, 4  ;;  %v661_v59 = vsel %vm549_vm15, %v652_v40, 0.0 }
 0x10c   : > { %v777_v42 = vrot.slane %v776_v30, 1  ;;  %v563_v44 = vrot.slane %v562_v22, 1  ;;  %v832_v48 = vrot.slane %v831_v31, 1  ;;  %v673_v55 = vrot.slane %v672_v32, 1 }
 0x10d   : > { %v617_v57 = vadd.f32 %v616_v38, %v615_v27  ;;  %v758_v7 = vsel %vm541_vm14, %v1817_v33, 0.0  ;;  %v813_v18 = vsel %vm541_vm14, %v1821_v28, 0.0  ;;  %v603_v35 = vadd.f32 %v602_v39, %v1826_v36 }
 0x10e   : > { %v778_v52 = vadd.f32 %v777_v42, %v776_v30  ;;  %v564_v54 = vadd.f32 %v563_v44, %v562_v22  ;;  %v553_v45 = vrot.slane %v552_v47, 2  ;;  %v608_v61 = vadd.f32 %v607_v19, %v606_v29 }
 0x10f   : > { %v820_v62 = vsel %vm549_vm15, %v811_v41, 0.0  ;;  %v833_v63 = vadd.f32 %v832_v48, %v831_v31  ;;  %v547_v0 = vrot.slane %v546_v49, 1  ;;  %v727_v1 = vadd.f32 %v726_v50, %v725_v5 }
 0x110   : > { %786 = vrot.lane.b32.xlu0 %v778_v52, %s1512_s8  ;;  %566 = vrot.lane.b32.xlu1 %v564_v54, %s1513_s18  ;;  %v767_v60 = vadd.f32 %v766_v51, %v765_v17  ;;  %v674_v33 = vadd.f32 %v673_v55, %v672_v32  ;;  %v618_v4 = vrot.slane %v617_v57, 1  ;;  %v662_v16 = vrot.slane %v661_v59, 4 }
 0x111   : > { %v821_v28 = vrot.slane %v820_v62, 4  ;;  %v866_v23 = vmul.f32 %v1801_v3, %v1805_v12  ;;  %v759_v24 = vrot.slane %v758_v7, 4  ;;  %v707_v25 = vmul.f32 %v1765_v21, %v1805_v12 }
 0x112   : > { %v604_v36 = vrot.slane %v603_v35, 1  ;;  %v554_v26 = vadd.f32 %v553_v45, %v552_v47  ;;  %v658_v27 = vadd.f32 %v657_v58, %v1845_v46  ;;  %v609_v5 = vrot.slane %v608_v61, 2 }
 0x113   : > { %v548_v29 = vadd.f32 %v547_v0, %v546_v49  ;;  %v768_v17 = vrot.slane %v767_v60, 2  ;;  %v814_v30 = vrot.slane %v813_v18, 4  ;;  %v709_v22 = vsel %vm541_vm14, %v1830_v37, 0.0 }
 0x114   : > { %841 = vrot.lane.b32.xlu0 %v833_v63, %s1514_s19  ;;  %676 = vrot.lane.b32.xlu1 %v674_v33, %s1515_s20  ;;  %v619_v31 = vadd.f32 %v618_v4, %v617_v57  ;;  %v728_v32 = vrot.slane %v727_v1, 1  ;;  %v663_v21 = vadd.f32 %v662_v16, %v661_v59  ;;  %v822_v12 = vadd.f32 %v821_v28, %v820_v62 }
 0x115   : > { %v865_v38 = vmul.f32 %v1801_v3, %v1777_v43  ;;  %v875_v39 = vsel %vm549_vm15, %v866_v23, 0.0  ;;  %v716_v40 = vsel %vm549_vm15, %v707_v25, 0.0  ;;  %v867_v46 = vmul.f32 %v1801_v3, %v1824_v34 }
 0x116   : > { %v605_v37 = vadd.f32 %v604_v36, %v603_v35  ;;  %v555_v41 = vrot.slane %v554_v26, 1  ;;  %v659_v42 = vrot.slane %v658_v27, 1  ;;  %v610_v44 = vadd.f32 %v609_v5, %v608_v61 }
 0x117   : > { %v769_v47 = vadd.f32 %v768_v17, %v767_v60  ;;  %v760_v19 = vadd.f32 %v759_v24, %v758_v7  ;;  %v815_v48 = vadd.f32 %v814_v30, %v813_v18  ;;  %v710_v43 = vrot.slane %v709_v22, 4 }
 0x118   : > { %621 = vrot.lane.b32.xlu0 %v619_v31, %s1516_s11  ;;  %571 = vrot.lane.b32.xlu1 %v548_v29, %s1513_s18  ;;  %v729_v49 = vadd.f32 %v728_v32, %v727_v1  ;;  %v664_v50 = vrot.slane %v663_v21, 2  ;;  %v823_v51 = vrot.slane %v822_v12, 2  ;;  %v717_v52 = vrot.slane %v716_v40, 4 }
 0x119   : > { %v868_v54 = vsel %vm541_vm14, %v865_v38, 0.0  ;;  %v882_v3 = vsel %vm557_vm0, %v867_v46, 0.0  ;;  %v876_v34 = vrot.slane %v875_v39, 4  ;;  %v556_v55 = vadd.f32 %v555_v41, %v554_v26 }
 0x11a   : > { %v660_v57 = vadd.f32 %v659_v42, %v658_v27  ;;  %v611_v58 = vrot.slane %v610_v44, 1  ;;  %v770_v59 = vrot.slane %v769_v47, 1  ;;  %v761_v7 = vrot.slane %v760_v19, 2 }
 0x11b   : > { %v816_v18 = vrot.slane %v815_v48, 2  ;;  %v711_v35 = vadd.f32 %v710_v43, %v709_v22  ;;  %v665_v45 = vadd.f32 %v664_v50, %v663_v21  ;;  %v824_v61 = vadd.f32 %v823_v51, %v822_v12 }
 0x11c   : > { %743 = vrot.lane.b32.xlu0 %v729_v49, %s1510_s7  ;;  %626 = vrot.lane.b32.xlu1 %v605_v37, %s1516_s11  ;;  %v718_v62 = vadd.f32 %v717_v52, %v716_v40  ;;  %v883_v63 = vrot.slane %v882_v3, 4  ;;  %v869_v0 = vrot.slane %v868_v54, 4  ;;  %v877_v1 = vadd.f32 %v876_v34, %v875_v39 }
 0x11d   : > { %v612_v60 = vadd.f32 %v611_v58, %v610_v44  ;;  %v771_v33 = vadd.f32 %v770_v59, %v769_v47  ;;  %v762_v4 = vadd.f32 %v761_v7, %v760_v19  ;;  %v817_v16 = vadd.f32 %v816_v18, %v815_v48 }
 0x11e   : > { %v712_v28 = vrot.slane %v711_v35, 2  ;;  %v666_v23 = vrot.slane %v665_v45, 1  ;;  %v825_v24 = vrot.slane %v824_v61, 1  ;;  %v719_v25 = vrot.slane %v718_v62, 2 }
 0x11f   : > { %v884_v36 = vadd.f32 %v883_v63, %v882_v3  ;;  %v870_v26 = vadd.f32 %v869_v0, %v868_v54  ;;  %v763_v27 = vrot.slane %v762_v4, 1  ;;  %v818_v5 = vrot.slane %v817_v16, 1 }
 0x120   : > { %573 = vrot.lane.b32.xlu0 %v556_v55, %s1513_s18  ;;  %681 = vrot.lane.b32.xlu1 %v660_v57, %s1515_s20  ;;  %v713_v29 = vadd.f32 %v712_v28, %v711_v35  ;;  %v878_v17 = vrot.slane %v877_v1, 2  ;;  %v667_v30 = vadd.f32 %v666_v23, %v665_v45  ;;  %v826_v22 = vadd.f32 %v825_v24, %v824_v61  ;;  %s1254_s18 = sshll.u32 %s1578_s25, 5 }
 0x121   : > { %v720_v31 = vadd.f32 %v719_v25, %v718_v62  ;;  %v885_v32 = vrot.slane %v884_v36, 2  ;;  %v764_v21 = vadd.f32 %v763_v27, %v762_v4  ;;  %v819_v12 = vadd.f32 %v818_v5, %v817_v16 }
 0x122   : > { %v879_v38 = vadd.f32 %v878_v17, %v877_v1  ;;  %v714_v39 = vrot.slane %v713_v29, 1  ;;  %v871_v37 = vrot.slane %v870_v26, 2  ;;  %v507_v59 = vand.u32 127, %v308_v2 }
 0x123   : > { %v721_v40 = vrot.slane %v720_v31, 1  ;;  %v886_v46 = vadd.f32 %v885_v32, %v884_v36  ;;  %vm794_vm15 = vcmask 1039360   ;;  %vm2120_vm0 = vcmask 15360  }
 0x124   : > { %628 = vrot.lane.b32.xlu0 %v612_v60, %s1516_s11  ;;  %784 = vrot.lane.b32.xlu1 %v771_v33, %s1512_s8  ;;  %v880_v41 = vrot.slane %v879_v38, 1  ;;  %v715_v42 = vadd.f32 %v714_v39, %v713_v29  ;;  %v872_v19 = vadd.f32 %v871_v37, %v870_v26  ;;  %v508_v35 = vadd.s32 128, %v507_v59 }
 0x125   : > { %v722_v44 = vadd.f32 %v721_v40, %v720_v31  ;;  %v887_v47 = vrot.slane %v886_v46, 1  ;;  %v513_v45 = vand.u32 15, %v507_v59 }
 0x126   : > { %v881_v43 = vadd.f32 %v880_v41, %v879_v38  ;;  %v873_v49 = vrot.slane %v872_v19, 1  ;;  %v520_v63 = vand.u32 15, %v508_v35 }
 0x127   : > { %v888_v48 = vadd.f32 %v887_v47, %v886_v46  ;;  %v1916_v0 = vadd.s32 4294967293, %v513_v45  ;;  %v637_v1 = vadd.s32 4294967294, %v513_v45  ;;  %v796_v28 = vadd.s32 1, %v513_v45 }
 0x128   : > { %683 = vrot.lane.b32.xlu0 %v667_v30, %s1515_s20  ;;  %839 = vrot.lane.b32.xlu1 %v826_v22, %s1514_s19  ;;  %v874_v50 = vadd.f32 %v873_v49, %v872_v19  ;;  %v1918_v4 = vadd.s32 4294967293, %v520_v63  ;;  %v638_v2 = vadd.s32 4294967294, %v520_v63  ;;  %v693_v16 = vadd.s32 4294967295, %v520_v63 }
 0x129   : > { %v797_v23 = vadd.s32 1, %v520_v63  ;;  %v851_v24 = vadd.s32 2, %v513_v45  ;;  %v852_v36 = vadd.s32 2, %v520_v63  ;;  %v692_v27 = vadd.s32 4294967295, %v513_v45 }
 0x12a   : > { %v906_v5 = vadd.s32 3, %v513_v45  ;;  %vm640_vm14 = vcmp.ge.s32.totalorder %v638_v2, 0  ;;  %v907_v29 = vadd.s32 3, %v520_v63 }
 0x12b   : > { %vm855_vm10 = vcmp.lt.s32.totalorder %v851_v24, 16  ;;  %vm694_vm8 = vcmp.ge.s32.totalorder %v692_v27, 0 }
 0x12c   : > { %782 = vrot.lane.b32.xlu0 %v764_v21, %s1512_s8  ;;  %837 = vrot.lane.b32.xlu1 %v819_v12, %s1514_s19  ;;  %vm911_vm3 = vcmp.lt.s32.totalorder %v907_v29, 16  ;;  %s1113_s19 = sshll.u32 %s1983_s17, 4  ;;  %s1114_s19 = int_to_ptr.vmem [resolvable:$true] %s1113_s19 }
 0x12d   : > { %s1398_s26 = scalar_lea.vmem %s1114_s19, 32 }
 0x12e   : > { %p1399_p12 = scmp.ne.s32.totalorder %s1114_s19, %s1398_s26 }
 0x130   : > { %739 = vrot.lane.b32.xlu0 %v715_v42, %s1510_s7  ;;  %741 = vrot.lane.b32.xlu1 %v722_v44, %s1510_s7  ;;  %p1400_p4 = pnand %p1399_p12, %p2147_p13  ;;  %s1402_s7 = sshll.u32 %s1518_s28, 4  ;;  %s1403_s7 = int_to_ptr.vmem [resolvable:$false] %s1402_s7 }
 0x131   : > { %s1404_s16 = scalar_lea.vmem %s1403_s7, 64  ;;  %p1405_p7 = scmp.lt.s32.totalorder %s1114_s19, %s1403_s7 }
 0x132   : > { %p1401_p5 = pneg %p1400_p4  ;;  %p1406_p8 = scmp.lt.s32.totalorder %s1404_s16, %s1398_s26 }
 0x134   : > { %896 = vrot.lane.b32.xlu0 %v888_v48, %s1517_s14  ;;  %894 = vrot.lane.b32.xlu1 %v881_v43, %s1517_s14  ;;  %p1407_p10 = por %p1406_p8, %p1405_p7 }
 0x136   : > { %p1408_p0 = pnand %p1407_p10, %p1401_p5 }
 0x138   : > { %892 = vrot.lane.b32.xlu1 %v874_v50, %s1517_s14  ;;  %s1111_s14 = scalar_lea.hbm %s2105_s6, %s1254_s18 }
 0x182   : > { %v787_v51 = vpop.permute.xlu0 %786  ;;  %v1905_v52 = vpop.permute.xlu1 %566 }
 0x186   : > { %v1907_v54 = vpop.permute.xlu0 %841  ;;  %v1909_v3 = vpop.permute.xlu1 %676 }
 0x18a   : > { %v622_v34 = vpop.permute.xlu0 %621  ;;  %v572_v55 = vpop.permute.xlu1 %571 }
 0x18e   : > { %v1911_v57 = vpop.permute.xlu0 %743  ;;  %v627_v58 = vpop.permute.xlu1 %626 }
 0x192   : > { %v1914_v7 = vpop.permute.xlu0 %573  ;;  %v682_v18 = vpop.permute.xlu1 %681 }
 0x193   : > { %v576_v32 = vsel %vm2118_vm13, %v572_v55, %v1914_v7  ;;  %vm2124_vm13 = vmmov %vm2122_vm9 }
 0x196   : > { %v629_v61 = vpop.permute.xlu0 %628  ;;  %v785_v62 = vpop.permute.xlu1 %784 }
 0x197   : > { %v631_v17 = vsel %vm630_vm4, %v627_v58, %v629_v61  ;;  %v632_v21 = vsel %vm630_vm4, %v629_v61, %v622_v34  ;;  %v790_v12 = vsel %vm2119_vm12, %v785_v62, %v787_v51  ;;  %vm2125_vm12 = vcmask 416768  }
 0x198   : > { %v636_v38 = vsel %vm2120_vm0, %v622_v34, %v631_v17  ;;  %v577_v47 = vsel %vm2125_vm12, %v1914_v7, %v1905_v52  ;;  %vm2126_vm4 = vcmask 23552   ;;  %v646_v51 = vsel %vm640_vm14, %v632_v21, 0.0 }
 0x199   : > { %v581_v19 = vsel %vm2126_vm4, %v1905_v52, %v576_v32  ;;  %vm2133_vm0 = vcmp.lt.s32.totalorder %v852_v36, 16  ;;  %vm2135_vm12 = vcmp.ge.s32.totalorder %v1918_v4, 0 }
 0x19a   : > { %v684_v60 = vpop.permute.xlu0 %683  ;;  %v840_v33 = vpop.permute.xlu1 %839  ;;  %v591_v7 = vsel %vm2135_vm12, %v577_v47, 0.0 }
 0x19b   : > { %v686_v30 = vsel %vm685_vm7, %v682_v18, %v684_v60  ;;  %v687_v39 = vsel %vm685_vm7, %v684_v60, %v1909_v3  ;;  %v845_v46 = vsel %vm2122_vm9, %v840_v33, %v1907_v54  ;;  %vm2127_vm7 = vcmask 392192  }
 0x19c   : > { %v691_v40 = vsel %vm2121_vm11, %v1909_v3, %v686_v30  ;;  %vm2128_vm11 = vmmov %vm2127_vm7  ;;  %vm2130_vm9 = vcmp.ge.s32.totalorder %v693_v16, 0  ;;  %v917_v61 = vadd.f32 %v646_v51, %v591_v7 }
 0x19d   : > { %v701_v54 = vsel %vm2130_vm9, %v687_v39, 0.0  ;;  %v700_v3 = vsel %vm694_vm8, %v691_v40, 0.0  ;;  %vm2136_vm8 = vcmask 367616  }
 0x19e   : > { %v783_v25 = vpop.permute.xlu0 %782  ;;  %v838_v26 = vpop.permute.xlu1 %837  ;;  %vm2137_vm14 = vmmov %vm2136_vm8 }
 0x19f   : > { %v789_v37 = vsel %vm2123_vm2, %v783_v25, %v785_v62  ;;  %v795_v41 = vsel %vm794_vm15, %v790_v12, %v783_v25  ;;  %v844_v42 = vsel %vm2124_vm13, %v838_v26, %v840_v33  ;;  %v850_v44 = vsel %vm849_vm5, %v845_v46, %v838_v26 }
 0x1a0   : > { %vm2129_vm2 = vcmp.ge.s32.totalorder %v637_v1, 0  ;;  %vm2131_vm5 = vcmp.lt.s32.totalorder %v796_v28, 16  ;;  %vm2132_vm15 = vcmp.lt.s32.totalorder %v797_v23, 16  ;;  %v859_v52 = vsel %vm855_vm10, %v844_v42, 0.0 }
 0x1a1   : > { %v645_v50 = vsel %vm2129_vm2, %v636_v38, 0.0  ;;  %v804_v55 = vsel %vm2131_vm5, %v789_v37, 0.0  ;;  %v805_v58 = vsel %vm2132_vm15, %v795_v41, 0.0  ;;  %v860_v59 = vsel %vm2133_vm0, %v850_v44, 0.0 }
 0x1a2   : > { %v740_v22 = vpop.permute.xlu0 %739  ;;  %v742_v31 = vpop.permute.xlu1 %741  ;;  %vm2134_vm13 = vcmp.ge.s32.totalorder %v1916_v0, 0  ;;  %v920_v1 = vadd.f32 %v859_v52, %v804_v55  ;;  %v921_v60 = vadd.f32 %v860_v59, %v805_v58  ;;  %vm2138_vm10 = vcmp.lt.s32.totalorder %v906_v5, 16 }
 0x1a3   : > { %v745_v48 = vsel %vm2127_vm7, %v740_v22, %v742_v31  ;;  %v746_v43 = vsel %vm2128_vm11, %v742_v31, %v1911_v57  ;;  %v590_v57 = vsel %vm2134_vm13, %v581_v19, 0.0 }
 0x1a4   : > { %v918_v18 = vadd.f32 %v745_v48, %v700_v3  ;;  %v919_v35 = vadd.f32 %v746_v43, %v701_v54  ;;  %v916_v45 = vadd.f32 %v645_v50, %v590_v57  ;;  %v998_v57 = vld [vmem:[%s2102_s3 + $0x18] sm:$0xff] }
 0x1a6   : > { %v895_v49 = vpop.permute.xlu1 %894  ;;  %v897_v34 = vpop.permute.xlu0 %896  ;;  %v922_v28 = vadd.f32 %v918_v18, %v916_v45  ;;  %v923_v4 = vadd.f32 %v919_v35, %v917_v61 }
 0x1a7   : > { %v900_v62 = vsel %vm2136_vm8, %v895_v49, %v897_v34 }
 0x1aa   : > { %v893_v63 = vpop.permute.xlu1 %892 }
 0x1ab   : > { %v899_v33 = vsel %vm2137_vm14, %v893_v63, %v895_v49  ;;  %v905_v2 = vsel %vm904_vm6, %v900_v62, %v893_v63 }
 0x1ac   : > { %v914_v16 = vsel %vm2138_vm10, %v899_v33, 0.0  ;;  %v915_v0 = vsel %vm911_vm3, %v905_v2, 0.0 }
 0x1ad   : > { %v924_v23 = vadd.f32 %v920_v1, %v914_v16  ;;  %v925_v24 = vadd.f32 %v921_v60, %v915_v0 }
 0x1af   : > { %v926_v25 = vadd.f32 %v924_v23, %v922_v28  ;;  %v927_v36 = vadd.f32 %v925_v24, %v923_v4  ;;  %v1000_v28 = vld [vmem:[%s2103_s4 + $0x8] sm:$0xff]  ;;  %v999_v4 = vld [vmem:[%s2103_s4] sm:$0xff]  ;;  %v1002_v24 = vld [vmem:[%s2103_s4 + $0x18] sm:$0xff] }
 0x1b1   : > { %v1238_v26 = vmul.f32 -1.442695, %v926_v25  ;;  %v1239_v27 = vmul.f32 -1.442695, %v927_v36  ;;  %v1001_v25 = vld [vmem:[%s2103_s4 + $0x10] sm:$0xff] }
 0x1b3   : > { %1338 = vpow2.f32 %v1238_v26 }
 0x1b4   : > { %1340 = vpow2.f32 %v1239_v27 }
 0x1c0   : > { %v1339_v17 = vpop.eup %1338 }
 0x1c1   : > { %v1341_v30 = vpop.eup %1340  ;;  %v934_v22 = vadd.f32 1.0, %v1339_v17 }
 0x1c2   : > { %v935_v31 = vadd.f32 1.0, %v1341_v30 }
 0x1c3   : > { %1342 = vrcp.f32 %v934_v22 }
 0x1c4   : > { %1344 = vrcp.f32 %v935_v31 }
 0x1d0   : > { %v1343_v5 = vpop.eup %1342 }
 0x1d1   : > { %v1345_v29 = vpop.eup %1344  ;;  %v962_v32 = vrot.slane %v1343_v5, %v1681_v6 }
 0x1d2   : > { %v966_v21 = vrot.slane %v1345_v29, %v1681_v6  ;;  %v942_v39 = vcombine.low %v1343_v5, %v1345_v29 }
 0x1d3   : > { %v969_v12 = vmul.f32 %v962_v32, %v1695_v10  ;;  %v967_v38 = vmul.f32 %v962_v32, %v1689_v8  ;;  %v971_v37 = vmul.f32 %v962_v32, %v1701_v13  ;;  %v973_v19 = vmul.f32 %v962_v32, %v1707_v15 }
 0x1d4   : > { %v970_v40 = vmul.f32 %v966_v21, %v1698_v11  ;;  %v968_v46 = vmul.f32 %v966_v21, %v1692_v9  ;;  %v972_v41 = vmul.f32 %v966_v21, %v1704_v14  ;;  %v974_v48 = vmul.f32 %v966_v21, %v1712_v20 }
 0x1d5   : > { %v977_v42 = vadd.f32 %v969_v12, %v1695_v10  ;;  %v975_v44 = vadd.f32 %v967_v38, %v1689_v8  ;;  %v949_v43 = vrot.slane %v942_v39, %v1727_v53  ;;  %v979_v51 = vadd.f32 %v971_v37, %v1701_v13  ;;  %v996_v13 = vld [vmem:[%s2102_s3 + $0x8] sm:$0xff] }
 0x1d6   : > { %v978_v6 = vadd.f32 %v970_v40, %v1698_v11  ;;  %v976_v47 = vadd.f32 %v968_v46, %v1692_v9  ;;  %v980_v54 = vadd.f32 %v972_v41, %v1704_v14  ;;  %v981_v9 = vadd.f32 %v973_v19, %v1707_v15  ;;  %v995_v14 = vld [vmem:[%s2102_s3] sm:$0xff]  ;;  %v997_v15 = vld [vmem:[%s2102_s3 + $0x10] sm:$0xff] }
 0x1d7   : > { %v956_v10 = vrot.slane %v949_v43, %v1727_v53  ;;  %v982_v11 = vadd.f32 %v974_v48, %v1712_v20 }
 0x1d8   : > { %v986_v49 = vmax.f32 %v977_v42, %v978_v6  ;;  %v983_v50 = vmax.f32 %v975_v44, %v976_v47  ;;  %v989_v8 = vmax.f32 %v979_v51, %v980_v54 }
 0x1d9   : > { %958 = vst.msk [vmem:[%s1983_s17] sm:$0x3] %vm1731_vm1, %v956_v10  ;;  %v992_v3 = vmax.f32 %v981_v9, %v982_v11  ;;  %vm2139_vm1 = vcmask 15360  }
 0x1da   : > { %987 = vmax.xlane.f32.xlu1 %v986_v49  ;;  %984 = vmax.xlane.f32.xlu0 %v983_v50  ;;  %vm2140_vm3 = vmmov %vm2139_vm1 }
 0x1db   : > { %vm2141_vm6 = vmmov %vm2139_vm1 }
 0x1dc   : > { %vm2142_vm4 = vmmov %vm2139_vm1 }
 0x1dd   : > { %vm2143_vm7 = vmmov %vm2139_vm1 }
 0x1de   : > { %990 = vmax.xlane.f32.xlu0 %v989_v8  ;;  %vm2144_vm11 = vmmov %vm2139_vm1 }
 0x1df   : > { %vm2145_vm2 = vmmov %vm2139_vm1 }
 0x1e0   : > { %vm2146_vm9 = vmmov %vm2139_vm1 }
 0x1e2   : > { %993 = vmax.xlane.f32.xlu0 %v992_v3 }
 0x263   : > { %v988_v53 = vpop.xlane.xlu1 %987  ;;  %v985_v56 = vpop.xlane.xlu0 %984 }
 0x264   : > { %v1004_v34 = vmul.f32 %v996_v13, %v988_v53  ;;  %v1003_v55 = vmul.f32 %v995_v14, %v985_v56 }
 0x266   : > { %v1008_v58 = vsel %vm2139_vm1, %v1004_v34, 0.0  ;;  %v1007_v52 = vsel %vm2140_vm3, %v1003_v55, 0.0 }
 0x267   : > { %v991_v20 = vpop.xlane.xlu0 %990  ;;  %v1009_v18 = vadd.f32 %v1008_v58, %v1007_v52 }
 0x268   : > { %v1005_v59 = vmul.f32 %v997_v15, %v991_v20 }
 0x26a   : > { %v1010_v7 = vsel %vm2141_vm6, %v1005_v59, 0.0 }
 0x26b   : > { %v994_v35 = vpop.xlane.xlu0 %993  ;;  %v1011_v61 = vadd.f32 %v1010_v7, %v1009_v18 }
 0x26c   : > { %v1006_v45 = vmul.f32 %v998_v57, %v994_v35 }
 0x26e   : > { %v1012_v62 = vsel %vm2142_vm4, %v1006_v45, 0.0 }
 0x26f   : > { %v1013_v63 = vadd.f32 %v1012_v62, %v1011_v61 }
 0x271   : > { %v1014_v1 = vrot.slane %v1013_v63, 4 }
 0x273   : > { %v1015_v60 = vadd.f32 %v1014_v1, %v1013_v63 }
 0x275   : > { %v1016_v33 = vrot.slane %v1015_v60, 2 }
 0x277   : > { %v1017_v2 = vadd.f32 %v1016_v33, %v1015_v60 }
 0x279   : > { %v1018_v16 = vrot.slane %v1017_v2, 1 }
 0x27b   : > { %v1019_v0 = vadd.f32 %v1018_v16, %v1017_v2 }
 0x27d   : > { %v1020_v23 = vmax.f32 %v1019_v0, 0.0 }
 0x27f   : > { %v1022_v36 = vmul.f32 %v1020_v23, %v1000_v28  ;;  %v1021_v26 = vmul.f32 %v1020_v23, %v999_v4  ;;  %v1024_v30 = vmul.f32 %v1020_v23, %v1002_v24  ;;  %v1023_v22 = vmul.f32 %v1020_v23, %v1001_v25 }
 0x281   : > { %v1028_v27 = vsel %vm2143_vm7, %v1022_v36, 0.0  ;;  %v1025_v17 = vsel %vm2144_vm11, %v1021_v26, 0.0  ;;  %v1034_v31 = vsel %vm2145_vm2, %v1024_v30, 0.0  ;;  %v1031_v5 = vsel %vm2146_vm9, %v1023_v22, 0.0 }
 0x282   : > { %1029 = vadd.xlane.f32.xlu0 %v1028_v27  ;;  %1026 = vadd.xlane.f32.xlu1 %v1025_v17 }
 0x286   : > { %1035 = vadd.xlane.f32.xlu0 %v1034_v31  ;;  %1032 = vadd.xlane.f32.xlu1 %v1031_v5 }
 0x287   : > { %1411 = shalt.err (!%p1408_p0)
}
 0x288   : > { %s1412_s17 = scalar_lea.hbm %s1111_s14, 32  ;;  %s1416_s20 = scalar_lea.hbm %s2105_s6, 64 }
 0x289   : > { %p1413_p2 = scmp.ne.s32.totalorder %s1111_s14, %s1412_s17  ;;  %p1417_p3 = scmp.lt.s32.totalorder %s1111_s14, %s2105_s6 }
 0x28a   : > { %p1418_p6 = scmp.lt.s32.totalorder %s1416_s20, %s1412_s17 }
 0x28b   : > { %p1414_p9 = pnand %p1413_p2, %p2147_p13 }
 0x28c   : > { %p1419_p11 = por %p1418_p6, %p1417_p3 }
 0x28d   : > { %p1415_p1 = pneg %p1414_p9 }
 0x28f   : > { %p1420_p12 = pnand %p1419_p11, %p1415_p1 }
 0x291   : > { %1423 = shalt.err (!%p1420_p12)
}
 0x292   : > { %1258 = dma.vmem_to_hbm [thread:$0]  (%p2147_p13), %s1114_s19, 32, %s1111_s14, %s1083_s15   ;;  %v1362_v50 = vld [vmem:[%s1660_s13 + $0x10] sm:$0xff]  ;;  %v1363_v54 = vld [vmem:[%s1660_s13 + $0x18] sm:$0xff]  ;;  %v1364_v8 = vld [vmem:[%s1660_s13] sm:$0xff] }
 0x293   : > { %v1365_v11 = vld [vmem:[%s1660_s13 + $0x8] sm:$0xff]  ;;  %s1253_s12 = sshll.u32 %s1578_s25, 10  ;;  %s2148_s19 = sshll.u32 %s1654_s29, 6  ;;  %v1366_v53 = vld [vmem:[%s1660_s13 + $0x30] sm:$0xff]  ;;  %v1367_v34 = vld [vmem:[%s1660_s13 + $0x38] sm:$0xff] }
 0x294   : > { %s286_s14 = scalar_lea.vmem [#allocation6], %s2148_s19  ;;  %s2052_s25 = scalar_lea.hbm %s2104_s5, %s1253_s12  ;;  %v1368_v15 = vld [vmem:[%s1660_s13 + $0x20] sm:$0xff]  ;;  %v1369_v58 = vld [vmem:[%s1660_s13 + $0x28] sm:$0xff] }
 0x295   : > { %s1096_s15 = sshll.u32 %s286_s14, 4  ;;  %s1078_s7 = scalar_lea.sflag [#allocation5], %s1654_s29  ;;  %s2054_s15 = int_to_ptr.vmem [resolvable:$true] %s1096_s15 }
 0x296   : > { %s1424_s16 = scalar_lea.vmem %s2054_s15, 1024  ;;  %s1519_s17 = smov [#allocation6]  }
 0x297   : > { %p1425_p4 = scmp.ne.s32.totalorder %s2054_s15, %s1424_s16  ;;  %s1428_s8 = sshll.u32 %s1519_s17, 4  ;;  %s1429_s8 = int_to_ptr.vmem [resolvable:$false] %s1428_s8 }
 0x298   : > { %s1430_s18 = scalar_lea.vmem %s1429_s8, 2048  ;;  %p1431_p8 = scmp.lt.s32.totalorder %s2054_s15, %s1429_s8 }
 0x299   : > { %p1426_p5 = pnand %p1425_p4, %p2147_p13  ;;  %p1432_p10 = scmp.lt.s32.totalorder %s1430_s18, %s1424_s16 }
 0x29b   : > { %p1427_p7 = pneg %p1426_p5  ;;  %p1433_p0 = por %p1432_p10, %p1431_p8 }
 0x29d   : > { %p1434_p2 = pnand %p1433_p0, %p1427_p7 }
 0x30b   : > { %v1030_v29 = vpop.xlane.xlu0 %1029  ;;  %v1027_v32 = vpop.xlane.xlu1 %1026 }
 0x30c   : > { %v1241_v21 = vmul.f32 -1.442695, %v1030_v29  ;;  %v1240_v12 = vmul.f32 -1.442695, %v1027_v32 }
 0x30e   : > { %1346 = vpow2.f32 %v1241_v21 }
 0x30f   : > { %1348 = vpow2.f32 %v1240_v12  ;;  %v1036_v38 = vpop.xlane.xlu0 %1035  ;;  %v1033_v39 = vpop.xlane.xlu1 %1032 }
 0x310   : > { %v1243_v40 = vmul.f32 -1.442695, %v1036_v38  ;;  %v1242_v46 = vmul.f32 -1.442695, %v1033_v39 }
 0x312   : > { %1350 = vpow2.f32 %v1243_v40 }
 0x313   : > { %1352 = vpow2.f32 %v1242_v46 }
 0x31b   : > { %v1347_v37 = vpop.eup %1346 }
 0x31c   : > { %v1349_v41 = vpop.eup %1348  ;;  %v1050_v42 = vadd.f32 1.0, %v1347_v37 }
 0x31d   : > { %v1049_v44 = vadd.f32 1.0, %v1349_v41 }
 0x31e   : > { %1354 = vrcp.f32 %v1050_v42 }
 0x31f   : > { %v1351_v6 = vpop.eup %1350  ;;  %1356 = vrcp.f32 %v1049_v44 }
 0x320   : > { %v1353_v47 = vpop.eup %1352  ;;  %v1052_v19 = vadd.f32 1.0, %v1351_v6 }
 0x321   : > { %v1051_v48 = vadd.f32 1.0, %v1353_v47 }
 0x322   : > { %1358 = vrcp.f32 %v1052_v19 }
 0x323   : > { %1360 = vrcp.f32 %v1051_v48 }
 0x32b   : > { %v1355_v43 = vpop.eup %1354 }
 0x32c   : > { %v1357_v49 = vpop.eup %1356  ;;  %v1063_v51 = vmul.f32 %v1362_v50, %v1355_v43  ;;  %v1064_v10 = vmul.f32 %v1363_v54, %v1355_v43 }
 0x32d   : > { %v1061_v9 = vmul.f32 %v1364_v8, %v1357_v49  ;;  %v1062_v3 = vmul.f32 %v1365_v11, %v1357_v49 }
 0x32e   : > { %1071 = vst [vmem:[%s286_s14 + $0x10] sm:$0xff] %v1063_v51  ;;  %1072 = vst [vmem:[%s286_s14 + $0x18] sm:$0xff] %v1064_v10 }
 0x32f   : > { %v1359_v13 = vpop.eup %1358  ;;  %1069 = vst [vmem:[%s286_s14] sm:$0xff] %v1061_v9  ;;  %1070 = vst [vmem:[%s286_s14 + $0x8] sm:$0xff] %v1062_v3 }
 0x330   : > { %v1361_v14 = vpop.eup %1360  ;;  %v1067_v56 = vmul.f32 %v1366_v53, %v1359_v13  ;;  %v1068_v55 = vmul.f32 %v1367_v34, %v1359_v13 }
 0x331   : > { %v1065_v20 = vmul.f32 %v1368_v15, %v1361_v14  ;;  %v1066_v52 = vmul.f32 %v1369_v58, %v1361_v14 }
 0x332   : > { %1075 = vst [vmem:[%s286_s14 + $0x30] sm:$0xff] %v1067_v56  ;;  %1076 = vst [vmem:[%s286_s14 + $0x38] sm:$0xff] %v1068_v55 }
 0x333   : > { %1073 = vst [vmem:[%s286_s14 + $0x20] sm:$0xff] %v1065_v20  ;;  %1074 = vst [vmem:[%s286_s14 + $0x28] sm:$0xff] %v1066_v52 }
 0x334   : > { %1437 = shalt.err (!%p1434_p2)
}
 0x335   : > { %s1438_s13 = scalar_lea.hbm %s2052_s25, 1024  ;;  %s1442_s12 = scalar_lea.hbm %s2104_s5, 2048 }
 0x336   : > { %p1439_p9 = scmp.ne.s32.totalorder %s2052_s25, %s1438_s13  ;;  %p1443_p6 = scmp.lt.s32.totalorder %s2052_s25, %s2104_s5 }
 0x337   : > { %p1444_p11 = scmp.lt.s32.totalorder %s1442_s12, %s1438_s13 }
 0x338   : > { %p1440_p1 = pnand %p1439_p9, %p2147_p13 }
 0x339   : > { %p1445_p12 = por %p1444_p11, %p1443_p6 }
 0x33a   : > { %p1441_p3 = pneg %p1440_p1 }
 0x33c   : > { %p1446_p4 = pnand %p1445_p12, %p1441_p3 }
 0x33e   : > { %1449 = shalt.err (!%p1446_p4)
}
 0x33f   : > { %s1520_s26 = smov 256   ;;  %s1521_s28 = smov 16  }
 0x340   : > { %1257 = dma.vmem_to_hbm [thread:$0]  (%p2147_p13), %s2054_s15, 1024, %s2052_s25, %s1078_s7, %s1520_s26, %s1520_s26, %s1521_s28  }
 0x341 PF: > { %s1125_s16 = sand.u32 1, %s1480_s21   ;;  %p2149_p5 = scmp.ne.s32.totalorder %s2113_s10, 0 }
 0x342   : > { %p2150_p7 = scmp.ge.s32.totalorder %s1492_s24, 2  ;;  %s1126_s17 = scalar_lea.sflag [#allocation5], %s1125_s16 }
 0x344   : > { %p1266_p8 = pnand %p2150_p7, %p2149_p5 }
 0x346   : > { %p1267_p10 = pneg %p1266_p8 }
 0x348   : > { %1471 = dma.done.wait (%p1267_p10), %s1126_s17, 1024  }
 0x349   : > { %1473 = vsyncadd (%p1267_p10), %s1126_s17, 4294966272  ;;  %s1135_s8 = scalar_lea.sflag [#allocation8], %s1125_s16 }
 0x34a   : > { %1475 = dma.done.wait (%p1267_p10), %s1135_s8, 32  }
 0x34b   : > { %1477 = vsyncadd (%p1267_p10), %s1135_s8, 4294967264  ;;  %p23_p13 = scmp.ge.s32.totalorder %s1582_s27, 4   ;;  %s2151_s21 = smov %s1484_s22 }
 0x34c   : > { %s2152_s22 = smov %s1488_s23  ;;  %s2153_s23 = smov %s1594_s30 }
 0x34d   : > { %s2154_s24 = smov %s1582_s27  ;;  %25 = sbr.rel (!%p23_p13) target bundleno = 7 (0x7), region = 105 }
 0x352   :  { %1140 = vsyncpa [#allocation4], 1 }
 0x353   :  { %1142 = vsyncpa [#allocation4 + $0x1], 1 }
 0x354   :  { %1143 = vsyncpa [#allocation5], 1 }
 0x355   :  { %1145 = vsyncpa [#allocation5 + $0x1], 1 }
 0x356   :  { %1146 = vsyncpa [#allocation8], 1 }
 0x357   :  { %1148 = vsyncpa [#allocation8 + $0x1], 1 }

</bundles_post_ra>
